<compile_context>
chip_gen: v7x
topology: tpu7x:2x2x1
jax: 0.10.0
libtpu: 0.0.40
codegen_flags: <defaults>
</compile_context>

<pallas_src>
import functools

import jax
import jax.numpy as jnp
import numpy as np
from jax.experimental import pallas as pl
from jax.experimental.pallas import tpu as pltpu


def _round_up(x, m):
    return (x + m - 1) // m * m


def _cdiv(a, b):
    return (a + b - 1) // b


# ---------------------------------------------------------------------------
# Pallas kernel: TH output rows of a 3x3 stride-2 conv (+ bias + ReLU).
# ---------------------------------------------------------------------------
def _conv_block_kernel(xm_ref, xx_ref, w01_ref, w2_ref, b_ref, o_ref, acc_ref):
    """Computes output rows [j*TH, (j+1)*TH) for the current (b, j) grid step.

    xm_ref : (1, 2*TH, Wo'+1, 2*Cin) bf16 padded input rows [2*TH*j, 2*TH*(j+1))
             with adjacent column pairs merged into channels
             (channels [0:Cin] = even input column, [Cin:2Cin] = odd column).
    xx_ref : (1, 1, Wo'+1, 2*Cin) bf16 padded input row 2*TH*(j+1) (the single
             extra row the dh == 2 taps of the last output row need).
    w01_ref: (3, 2*Cin, Cpad) bf16, per dh the taps dw=0 / dw=1 stacked along K.
    w2_ref : (3, Cin, Cpad) bf16, per dh the tap dw=2.
    b_ref  : (1, Cpad) f32 bias.
    o_ref  : (1, TH*Wo', Cpad) bf16 spatially-flattened output block.
    acc_ref: (TH*Wo', Cpad) f32 VMEM accumulator scratch.
    """
    th2, wop1, c2 = xm_ref.shape[1], xm_ref.shape[2], xm_ref.shape[3]
    th = th2 // 2
    wop = wop1 - 1
    cin = w2_ref.shape[1]
    m = th * wop

    # (2*TH, Wo'+1, C2) -> (TH, 2, Wo'+1, C2): leading-dim split is free, so
    # selecting a row parity is a plain slice of a non-layout dim.
    xm = xm_ref[0].reshape(th, 2, wop1, c2)
    plane0 = xm[:, 0]                         # padded rows 2t      (dh = 0)
    plane1 = xm[:, 1]                         # padded rows 2t + 1  (dh = 1)
    if th > 1:                                # padded rows 2t + 2  (dh = 2)
        plane2 = jnp.concatenate([xm[1:, 0], xx_ref[0]], axis=0)
    else:
        plane2 = xx_ref[0]
    planes = (plane0, plane1, plane2)

    for dh in range(3):
        rows = planes[dh]                     # (TH, Wo'+1, C2)
        # dw=0 and dw=1 in one K = 2*Cin matmul (channel-merged layout);
        # dw=2 as a K = Cin matmul on the +1 super-column slice.
        a01 = rows[:, :wop, :].reshape(m, c2)
        a2 = rows[:, 1:, :cin].reshape(m, cin)
        part = jnp.dot(a01, w01_ref[dh], preferred_element_type=jnp.float32)
        part = part + jnp.dot(a2, w2_ref[dh], preferred_element_type=jnp.float32)
        if dh == 0:
            acc_ref[...] = part
        else:
            acc_ref[...] += part

    y = acc_ref[...] + b_ref[...]             # f32 bias, broadcast over rows
    o_ref[0] = jnp.maximum(y, 0.0).astype(o_ref.dtype)


# ---------------------------------------------------------------------------
# One backbone stage: 3x3 conv, stride 2, pad 1, + bias + ReLU (NHWC, bf16)
# ---------------------------------------------------------------------------
def _conv3x3_s2_relu(x_nhwc, w, b, target_m=256):
    """x: [B,H,W,Cin] bf16, w: [3,3,Cin,Cout] f32 (HWIO), b: [Cout] f32.
    Returns [B,Ho,Wo,Cout] bf16 with Ho=(H+1)//2, Wo=(W+1)//2."""
    B, H, W, cin = x_nhwc.shape
    cout = w.shape[3]
    ho, wo = (H + 1) // 2, (W + 1) // 2        # PyTorch conv output size
    wop = _round_up(wo, 8)                     # sublane-friendly tile rows
    cin_p = _round_up(max(cin, 8), 8)
    c2 = 2 * cin_p
    cpad = _round_up(cout, 128)                # lane-dense output stores
    # TODO(synk): real backbone stages have cout >= 128 so Cpad padding is a
    # no-op; for the tiny synthetic stages it inflates the output writes.

    # Output-row block height: aim for M = TH * Wo' >= target_m MXU rows
    # (128 already suffices on v5e; 256 matches the v6e/v7x MXU).
    th = min(ho, max(1, _cdiv(target_m, wop)))
    nblk = _cdiv(ho, th)
    th = _cdiv(ho, nblk)                       # rebalance to minimise waste
    hop = nblk * th

    # Weights: zero-pad to (Cin_p, Cpad); stack taps (dw=0, dw=1) along K to
    # match the column-pair-merged activation layout; tap dw=2 separate.
    w_full = jnp.zeros((3, 3, cin_p, cpad), jnp.float32)
    w_full = w_full.at[:, :, :cin, :cout].set(w)
    w01 = jnp.concatenate([w_full[:, 0], w_full[:, 1]], axis=1).astype(jnp.bfloat16)
    w2 = w_full[:, 2].astype(jnp.bfloat16)
    b_full = jnp.zeros((1, cpad), jnp.float32).at[0, :cout].set(b)

    # Single padded activation plane in HBM: conv padding (1 top / 1 left) plus
    # bottom/right zero fill so every stride-2 tap stays in bounds, channels
    # zero-padded to Cin_p, then adjacent column pairs merged into channels
    # (a contiguous, free reshape).
    hp = 2 * hop + 1
    pad_b = 2 * hop - H
    pad_r = 2 * wop + 1 - W
    xp = jnp.pad(x_nhwc, ((0, 0), (1, pad_b), (1, pad_r), (0, cin_p - cin)))
    xq = xp.reshape(B, hp, wop + 1, c2)

    out = pl.pallas_call(
        _conv_block_kernel,
        out_shape=jax.ShapeDtypeStruct((B, hop * wop, cpad), jnp.bfloat16),
        grid=(B, nblk),
        in_specs=[
            # main 2*TH-row input block
            pl.BlockSpec((1, 2 * th, wop + 1, c2), lambda bb, j: (bb, j, 0, 0)),
            # one extra row at 2*TH*(j+1) for the last output row's dh==2 taps
            pl.BlockSpec((1, 1, wop + 1, c2),
                         lambda bb, j: (bb, 2 * th * (j + 1), 0, 0)),
            pl.BlockSpec((3, c2, cpad), lambda bb, j: (0, 0, 0)),
            pl.BlockSpec((3, cin_p, cpad), lambda bb, j: (0, 0, 0)),
            pl.BlockSpec((1, cpad), lambda bb, j: (0, 0)),
        ],
        out_specs=pl.BlockSpec((1, th * wop, cpad), lambda bb, j: (bb, j, 0)),
        scratch_shapes=[pltpu.VMEM((th * wop, cpad), jnp.float32)],
        compiler_params=pltpu.CompilerParams(
            dimension_semantics=("parallel", "parallel"),
            vmem_limit_bytes=32 * 1024 * 1024),
    )(xq, xq, w01, w2, b_full)

    out = out.reshape(B, hop, wop, cpad)[:, :ho, :wo, :cout]
    return out


# ---------------------------------------------------------------------------
# Mask resize: F.interpolate(mask.float(), size=(Hf, Wf)) (default 'nearest')
# then .to(torch.bool).  Pure gather -> kept as JAX glue.
# ---------------------------------------------------------------------------
def _nearest_resize_mask(mask_nchw, hf, wf):
    # TODO(synk): matches PyTorch legacy 'nearest'; 'nearest-exact' would need
    # a +0.5 source offset.
    B, _, H, W = mask_nchw.shape
    ri = (jnp.arange(hf) * H) // hf
    ci = (jnp.arange(wf) * W) // wf
    m = mask_nchw.astype(jnp.float32)[:, :, ri, :][:, :, :, ci]
    return m.astype(jnp.bool_)


# ---------------------------------------------------------------------------
# Synthetic backbone "body" parameters
# ---------------------------------------------------------------------------
_STAGE_CHANNELS = (8, 16, 32, 64)


def init_backbone_params(key, in_channels=3, stage_channels=_STAGE_CHANNELS):
    params = []
    c_in = in_channels
    for c_out in stage_channels:
        key, kw = jax.random.split(key)
        w = (jax.random.normal(kw, (3, 3, c_in, c_out), dtype=jnp.float32)
             * (2.0 / (9 * c_in)) ** 0.5)
        b = jnp.zeros((c_out,), dtype=jnp.float32)
        params.append((w, b))
        c_in = c_out
    return params


def backbone_base_forward(input_tensors, params, return_interm_indices,
                          export=False):
    """Mirror of BackboneBase.forward.

    Args:
      input_tensors: [B, 4, H, W] float32 NCHW (image ch 0..2, mask ch 3),
                     or [B, 3, H, W] when export=True.
    Returns:
      dict {str(layer_index): (feature NCHW float32, mask [B,1,Hf,Wf] bool)}
    """
    if export:
        B, _, H, W = input_tensors.shape
        masks = jnp.zeros((B, 1, H, W), dtype=input_tensors.dtype)
        image = input_tensors
    else:
        masks = input_tensors[:, 3:4]
        image = input_tensors[:, :3]

    # body (IntermediateLayerGetter-style); NHWC bf16 between stages; the
    # NCHW transpose / f32 cast happen once per returned feature at the end.
    x = jnp.transpose(image, (0, 2, 3, 1)).astype(jnp.bfloat16)
    xs = {}
    for layer_index, (w, b) in enumerate(params):
        x = _conv3x3_s2_relu(x, w, b)
        if layer_index in return_interm_indices:
            xs["{}".format(layer_index)] = x

    out = {}
    for name, feat in xs.items():
        hf, wf = feat.shape[1], feat.shape[2]
        mask = _nearest_resize_mask(masks, hf, wf)
        feat_nchw = jnp.transpose(feat.astype(jnp.float32), (0, 3, 1, 2))
        out[name] = (feat_nchw, mask)
    return out


# ---------------------------------------------------------------------------
# Pure-JAX reference (same dtype pipeline) for correctness checking
# ---------------------------------------------------------------------------
def _reference_forward(input_tensors, params, return_interm_indices):
    masks = input_tensors[:, 3:4]
    image = input_tensors[:, :3]
    x = jnp.transpose(image, (0, 2, 3, 1)).astype(jnp.bfloat16).astype(jnp.float32)
    out = {}
    for idx, (w, b) in enumerate(params):
        w_bf = w.astype(jnp.bfloat16).astype(jnp.float32)
        y = jax.lax.conv_general_dilated(
            x, w_bf, window_strides=(2, 2), padding=((1, 1), (1, 1)),
            dimension_numbers=("NHWC", "HWIO", "NHWC"),
            precision=jax.lax.Precision.HIGHEST)
        y = jnp.maximum(y + b, 0.0)
        x = y.astype(jnp.bfloat16).astype(jnp.float32)
        if idx in return_interm_indices:
            hf, wf = x.shape[1], x.shape[2]
            out[str(idx)] = (jnp.transpose(x, (0, 3, 1, 2)),
                             _nearest_resize_mask(masks, hf, wf))
    return out


if __name__ == "__main__":
    key = jax.random.PRNGKey(0)
    key, k_img, k_msk, k_par = jax.random.split(key, 4)

    B, H, W = 2, 16, 16
    image = jax.random.normal(k_img, (B, 3, H, W), dtype=jnp.float32)
    mask = (jax.random.uniform(k_msk, (B, 1, H, W)) > 0.5).astype(jnp.float32)
    input_tensors = jnp.concatenate([image, mask], axis=1)      # [B, 4, H, W]

    params = init_backbone_params(k_par)
    return_interm_indices = (1, 2, 3)                           # typical D-DETR

    fwd = jax.jit(functools.partial(backbone_base_forward,
                                    return_interm_indices=return_interm_indices,
                                    export=False))
    out = jax.block_until_ready(fwd(input_tensors, params))
    ref = jax.block_until_ready(
        _reference_forward(input_tensors, params, return_interm_indices))

    for idx in return_interm_indices:
        feat, msk = out[str(idx)]
        rfeat, rmsk = ref[str(idx)]
        hf = H // (2 ** (idx + 1))
        assert feat.shape == (B, _STAGE_CHANNELS[idx], hf, hf), feat.shape
        assert msk.shape == (B, 1, hf, hf), msk.shape
        assert msk.dtype == jnp.bool_
        np.testing.assert_allclose(np.asarray(feat), np.asarray(rfeat),
                                   rtol=2e-2, atol=2e-2)
        assert np.array_equal(np.asarray(msk), np.asarray(rmsk))

    # Odd spatial size: checks the PyTorch (H+1)//2 output-size semantics.
    H2, W2 = 15, 13
    img2 = jax.random.normal(key, (B, 3, H2, W2), dtype=jnp.float32)
    msk2 = (jax.random.uniform(k_msk, (B, 1, H2, W2)) > 0.5).astype(jnp.float32)
    inp2 = jnp.concatenate([img2, msk2], axis=1)
    out2 = jax.block_until_ready(fwd(inp2, params))
    ref2 = jax.block_until_ready(
        _reference_forward(inp2, params, return_interm_indices))
    for idx in return_interm_indices:
        f2, m2 = out2[str(idx)]
        r2, rm2 = ref2[str(idx)]
        assert f2.shape == r2.shape, (f2.shape, r2.shape)
        np.testing.assert_allclose(np.asarray(f2), np.asarray(r2),
                                   rtol=2e-2, atol=2e-2)
        assert np.array_equal(np.asarray(m2), np.asarray(rm2))

    print("KERNEL_OK")
</pallas_src>

<mosaic_0001>
module attributes {stable_mosaic.version = 11 : i64} {
  func.func @_conv_block_kernel(%arg0: i32, %arg1: i32, %arg2: memref<1x16x9x16xbf16, #tpu.memory_space<vmem>>, %arg3: memref<1x1x9x16xbf16, #tpu.memory_space<vmem>>, %arg4: memref<3x16x128xbf16, #tpu.memory_space<vmem>>, %arg5: memref<3x8x128xbf16, #tpu.memory_space<vmem>>, %arg6: memref<1x128xf32, #tpu.memory_space<vmem>>, %arg7: memref<1x64x128xbf16, #tpu.memory_space<vmem>>, %arg8: memref<64x128xf32, #tpu.memory_space<vmem>>) attributes {dimension_semantics = [#tpu.dimension_semantics<parallel>, #tpu.dimension_semantics<parallel>], iteration_bounds = array<i64: 2, 1>, scalar_prefetch = 0 : i64, scratch_operands = 1 : i64, tpu.core_type = #tpu.core_type<tc>, window_params = [{transform_indices = @transform_0, window_bounds = array<i64: 1, 16, 9, 16>}, {transform_indices = @transform_1, window_bounds = array<i64: 1, 1, 9, 16>}, {pipeline_mode = #tpu.pipeline_mode<synchronous>, transform_indices = @transform_2, window_bounds = array<i64: 3, 16, 128>}, {pipeline_mode = #tpu.pipeline_mode<synchronous>, transform_indices = @transform_3, window_bounds = array<i64: 3, 8, 128>}, {pipeline_mode = #tpu.pipeline_mode<synchronous>, transform_indices = @transform_4, window_bounds = array<i64: 1, 128>}, {transform_indices = @transform_5, window_bounds = array<i64: 1, 64, 128>}]} {
    %c0 = arith.constant 0 : index
    %c0_0 = arith.constant 0 : index
    %c0_1 = arith.constant 0 : index
    %c0_2 = arith.constant 0 : index
    %0 = vector.load %arg2[%c0, %c0_0, %c0_1, %c0_2] : memref<1x16x9x16xbf16, #tpu.memory_space<vmem>>, vector<1x16x9x16xbf16>
    %1 = vector.shape_cast %0 : vector<1x16x9x16xbf16> to vector<16x9x16xbf16>
    %2 = vector.shape_cast %1 : vector<16x9x16xbf16> to vector<8x2x9x16xbf16>
    %3 = vector.extract_strided_slice %2 {offsets = [0, 0, 0, 0], sizes = [8, 1, 9, 16], strides = [1, 1, 1, 1]} : vector<8x2x9x16xbf16> to vector<8x1x9x16xbf16>
    %4 = vector.shape_cast %3 : vector<8x1x9x16xbf16> to vector<8x9x16xbf16>
    %5 = vector.extract_strided_slice %2 {offsets = [0, 1, 0, 0], sizes = [8, 1, 9, 16], strides = [1, 1, 1, 1]} : vector<8x2x9x16xbf16> to vector<8x1x9x16xbf16>
    %6 = vector.shape_cast %5 : vector<8x1x9x16xbf16> to vector<8x9x16xbf16>
    %7 = vector.extract_strided_slice %2 {offsets = [1, 0, 0, 0], sizes = [7, 1, 9, 16], strides = [1, 1, 1, 1]} : vector<8x2x9x16xbf16> to vector<7x1x9x16xbf16>
    %8 = vector.shape_cast %7 : vector<7x1x9x16xbf16> to vector<7x9x16xbf16>
    %c0_3 = arith.constant 0 : index
    %c0_4 = arith.constant 0 : index
    %c0_5 = arith.constant 0 : index
    %c0_6 = arith.constant 0 : index
    %9 = vector.load %arg3[%c0_3, %c0_4, %c0_5, %c0_6] : memref<1x1x9x16xbf16, #tpu.memory_space<vmem>>, vector<1x1x9x16xbf16>
    %10 = vector.shape_cast %9 : vector<1x1x9x16xbf16> to vector<1x9x16xbf16>
    %11 = tpu.concatenate %8, %10 in 0 : vector<7x9x16xbf16>, vector<1x9x16xbf16> -> vector<8x9x16xbf16>
    %12 = vector.extract_strided_slice %4 {offsets = [0, 0, 0], sizes = [8, 8, 16], strides = [1, 1, 1]} : vector<8x9x16xbf16> to vector<8x8x16xbf16>
    %13 = vector.shape_cast %12 : vector<8x8x16xbf16> to vector<64x16xbf16>
    %14 = vector.extract_strided_slice %4 {offsets = [0, 1, 0], sizes = [8, 8, 8], strides = [1, 1, 1]} : vector<8x9x16xbf16> to vector<8x8x8xbf16>
    %15 = vector.shape_cast %14 : vector<8x8x8xbf16> to vector<64x8xbf16>
    %c0_7 = arith.constant 0 : index
    %c0_8 = arith.constant 0 : index
    %c0_9 = arith.constant 0 : index
    %16 = vector.load %arg4[%c0_7, %c0_8, %c0_9] : memref<3x16x128xbf16, #tpu.memory_space<vmem>>, vector<1x16x128xbf16>
    %17 = vector.shape_cast %16 : vector<1x16x128xbf16> to vector<16x128xbf16>
    %cst = arith.constant dense<0.000000e+00> : vector<64x128xf32>
    %18 = tpu.matmul %13, %17, %cst {dimension_numbers = #tpu.dot_dimension_numbers<[1], [0], [0], [1], [0, 0, 1, 1], [], []>} : vector<64x16xbf16>, vector<16x128xbf16>, vector<64x128xf32> -> vector<64x128xf32>
    %c0_10 = arith.constant 0 : index
    %c0_11 = arith.constant 0 : index
    %c0_12 = arith.constant 0 : index
    %19 = vector.load %arg5[%c0_10, %c0_11, %c0_12] : memref<3x8x128xbf16, #tpu.memory_space<vmem>>, vector<1x8x128xbf16>
    %20 = vector.shape_cast %19 : vector<1x8x128xbf16> to vector<8x128xbf16>
    %cst_13 = arith.constant dense<0.000000e+00> : vector<64x128xf32>
    %21 = tpu.matmul %15, %20, %cst_13 {dimension_numbers = #tpu.dot_dimension_numbers<[1], [0], [0], [1], [0, 0, 1, 1], [], []>} : vector<64x8xbf16>, vector<8x128xbf16>, vector<64x128xf32> -> vector<64x128xf32>
    %22 = arith.addf %18, %21 : vector<64x128xf32>
    %c0_14 = arith.constant 0 : index
    %c0_15 = arith.constant 0 : index
    %23 = vector.load %arg8[%c0_14, %c0_15] : memref<64x128xf32, #tpu.memory_space<vmem>>, vector<64x128xf32>
    tpu.vector_store %arg8[%c0_14, %c0_15], %22 {strides = array<i32>} : memref<64x128xf32, #tpu.memory_space<vmem>>, vector<64x128xf32>,
    %24 = vector.extract_strided_slice %6 {offsets = [0, 0, 0], sizes = [8, 8, 16], strides = [1, 1, 1]} : vector<8x9x16xbf16> to vector<8x8x16xbf16>
    %25 = vector.shape_cast %24 : vector<8x8x16xbf16> to vector<64x16xbf16>
    %26 = vector.extract_strided_slice %6 {offsets = [0, 1, 0], sizes = [8, 8, 8], strides = [1, 1, 1]} : vector<8x9x16xbf16> to vector<8x8x8xbf16>
    %27 = vector.shape_cast %26 : vector<8x8x8xbf16> to vector<64x8xbf16>
    %c1 = arith.constant 1 : index
    %c0_16 = arith.constant 0 : index
    %c0_17 = arith.constant 0 : index
    %28 = vector.load %arg4[%c1, %c0_16, %c0_17] : memref<3x16x128xbf16, #tpu.memory_space<vmem>>, vector<1x16x128xbf16>
    %29 = vector.shape_cast %28 : vector<1x16x128xbf16> to vector<16x128xbf16>
    %cst_18 = arith.constant dense<0.000000e+00> : vector<64x128xf32>
    %30 = tpu.matmul %25, %29, %cst_18 {dimension_numbers = #tpu.dot_dimension_numbers<[1], [0], [0], [1], [0, 0, 1, 1], [], []>} : vector<64x16xbf16>, vector<16x128xbf16>, vector<64x128xf32> -> vector<64x128xf32>
    %c1_19 = arith.constant 1 : index
    %c0_20 = arith.constant 0 : index
    %c0_21 = arith.constant 0 : index
    %31 = vector.load %arg5[%c1_19, %c0_20, %c0_21] : memref<3x8x128xbf16, #tpu.memory_space<vmem>>, vector<1x8x128xbf16>
    %32 = vector.shape_cast %31 : vector<1x8x128xbf16> to vector<8x128xbf16>
    %cst_22 = arith.constant dense<0.000000e+00> : vector<64x128xf32>
    %33 = tpu.matmul %27, %32, %cst_22 {dimension_numbers = #tpu.dot_dimension_numbers<[1], [0], [0], [1], [0, 0, 1, 1], [], []>} : vector<64x8xbf16>, vector<8x128xbf16>, vector<64x128xf32> -> vector<64x128xf32>
    %34 = arith.addf %30, %33 : vector<64x128xf32>
    %c0_23 = arith.constant 0 : index
    %c0_24 = arith.constant 0 : index
    %35 = vector.load %arg8[%c0_23, %c0_24] : memref<64x128xf32, #tpu.memory_space<vmem>>, vector<64x128xf32>
    %36 = arith.addf %35, %34 : vector<64x128xf32>
    %c0_25 = arith.constant 0 : index
    %c0_26 = arith.constant 0 : index
    %37 = vector.load %arg8[%c0_25, %c0_26] : memref<64x128xf32, #tpu.memory_space<vmem>>, vector<64x128xf32>
    tpu.vector_store %arg8[%c0_25, %c0_26], %36 {strides = array<i32>} : memref<64x128xf32, #tpu.memory_space<vmem>>, vector<64x128xf32>,
    %38 = vector.extract_strided_slice %11 {offsets = [0, 0, 0], sizes = [8, 8, 16], strides = [1, 1, 1]} : vector<8x9x16xbf16> to vector<8x8x16xbf16>
    %39 = vector.shape_cast %38 : vector<8x8x16xbf16> to vector<64x16xbf16>
    %40 = vector.extract_strided_slice %11 {offsets = [0, 1, 0], sizes = [8, 8, 8], strides = [1, 1, 1]} : vector<8x9x16xbf16> to vector<8x8x8xbf16>
    %41 = vector.shape_cast %40 : vector<8x8x8xbf16> to vector<64x8xbf16>
    %c2 = arith.constant 2 : index
    %c0_27 = arith.constant 0 : index
    %c0_28 = arith.constant 0 : index
    %42 = vector.load %arg4[%c2, %c0_27, %c0_28] : memref<3x16x128xbf16, #tpu.memory_space<vmem>>, vector<1x16x128xbf16>
    %43 = vector.shape_cast %42 : vector<1x16x128xbf16> to vector<16x128xbf16>
    %cst_29 = arith.constant dense<0.000000e+00> : vector<64x128xf32>
    %44 = tpu.matmul %39, %43, %cst_29 {dimension_numbers = #tpu.dot_dimension_numbers<[1], [0], [0], [1], [0, 0, 1, 1], [], []>} : vector<64x16xbf16>, vector<16x128xbf16>, vector<64x128xf32> -> vector<64x128xf32>
    %c2_30 = arith.constant 2 : index
    %c0_31 = arith.constant 0 : index
    %c0_32 = arith.constant 0 : index
    %45 = vector.load %arg5[%c2_30, %c0_31, %c0_32] : memref<3x8x128xbf16, #tpu.memory_space<vmem>>, vector<1x8x128xbf16>
    %46 = vector.shape_cast %45 : vector<1x8x128xbf16> to vector<8x128xbf16>
    %cst_33 = arith.constant dense<0.000000e+00> : vector<64x128xf32>
    %47 = tpu.matmul %41, %46, %cst_33 {dimension_numbers = #tpu.dot_dimension_numbers<[1], [0], [0], [1], [0, 0, 1, 1], [], []>} : vector<64x8xbf16>, vector<8x128xbf16>, vector<64x128xf32> -> vector<64x128xf32>
    %48 = arith.addf %44, %47 : vector<64x128xf32>
    %c0_34 = arith.constant 0 : index
    %c0_35 = arith.constant 0 : index
    %49 = vector.load %arg8[%c0_34, %c0_35] : memref<64x128xf32, #tpu.memory_space<vmem>>, vector<64x128xf32>
    %50 = arith.addf %49, %48 : vector<64x128xf32>
    %c0_36 = arith.constant 0 : index
    %c0_37 = arith.constant 0 : index
    %51 = vector.load %arg8[%c0_36, %c0_37] : memref<64x128xf32, #tpu.memory_space<vmem>>, vector<64x128xf32>
    tpu.vector_store %arg8[%c0_36, %c0_37], %50 {strides = array<i32>} : memref<64x128xf32, #tpu.memory_space<vmem>>, vector<64x128xf32>,
    %c0_38 = arith.constant 0 : index
    %c0_39 = arith.constant 0 : index
    %52 = vector.load %arg8[%c0_38, %c0_39] : memref<64x128xf32, #tpu.memory_space<vmem>>, vector<64x128xf32>
    %c0_40 = arith.constant 0 : index
    %c0_41 = arith.constant 0 : index
    %53 = vector.load %arg6[%c0_40, %c0_41] : memref<1x128xf32, #tpu.memory_space<vmem>>, vector<1x128xf32>
    %54 = vector.broadcast %53 : vector<1x128xf32> to vector<64x128xf32>
    %55 = arith.addf %52, %54 : vector<64x128xf32>
    %cst_42 = arith.constant 0.000000e+00 : f32
    %56 = vector.broadcast %cst_42 : f32 to vector<64x128xf32>
    %57 = arith.maximumf %55, %56 : vector<64x128xf32>
    %58 = arith.truncf %57 : vector<64x128xf32> to vector<64x128xbf16>
    %c0_43 = arith.constant 0 : index
    %c0_44 = arith.constant 0 : index
    %c0_45 = arith.constant 0 : index
    %59 = vector.load %arg7[%c0_43, %c0_44, %c0_45] : memref<1x64x128xbf16, #tpu.memory_space<vmem>>, vector<1x64x128xbf16>
    %60 = vector.shape_cast %59 : vector<1x64x128xbf16> to vector<64x128xbf16>
    %61 = vector.shape_cast %58 : vector<64x128xbf16> to vector<1x64x128xbf16>
    tpu.vector_store %arg7[%c0_43, %c0_44, %c0_45], %61 {strides = array<i32>} : memref<1x64x128xbf16, #tpu.memory_space<vmem>>, vector<1x64x128xbf16>,
    return
  }
  func.func @transform_0(%arg0: i32, %arg1: i32) -> (i32, i32, i32, i32) {
    %c0_i32 = arith.constant 0 : i32
    %c0_i32_0 = arith.constant 0 : i32
    %c0_i32_1 = arith.constant 0 : i32
    return %arg0, %arg1, %c0_i32, %c0_i32_0 : i32, i32, i32, i32
  }
  func.func @transform_1(%arg0: i32, %arg1: i32) -> (i32, i32, i32, i32) {
    %c1_i32 = arith.constant 1 : i32
    %0 = arith.addi %arg1, %c1_i32 : i32
    %c16_i32 = arith.constant 16 : i32
    %1 = arith.muli %c16_i32, %0 : i32
    %c0_i32 = arith.constant 0 : i32
    %c0_i32_0 = arith.constant 0 : i32
    %c0_i32_1 = arith.constant 0 : i32
    return %arg0, %1, %c0_i32, %c0_i32_0 : i32, i32, i32, i32
  }
  func.func @transform_2(%arg0: i32, %arg1: i32) -> (i32, i32, i32) {
    %c0_i32 = arith.constant 0 : i32
    %c0_i32_0 = arith.constant 0 : i32
    %c0_i32_1 = arith.constant 0 : i32
    %c0_i32_2 = arith.constant 0 : i32
    return %c0_i32, %c0_i32_0, %c0_i32_1 : i32, i32, i32
  }
  func.func @transform_3(%arg0: i32, %arg1: i32) -> (i32, i32, i32) {
    %c0_i32 = arith.constant 0 : i32
    %c0_i32_0 = arith.constant 0 : i32
    %c0_i32_1 = arith.constant 0 : i32
    %c0_i32_2 = arith.constant 0 : i32
    return %c0_i32, %c0_i32_0, %c0_i32_1 : i32, i32, i32
  }
  func.func @transform_4(%arg0: i32, %arg1: i32) -> (i32, i32) {
    %c0_i32 = arith.constant 0 : i32
    %c0_i32_0 = arith.constant 0 : i32
    %c0_i32_1 = arith.constant 0 : i32
    return %c0_i32, %c0_i32_0 : i32, i32
  }
  func.func @transform_5(%arg0: i32, %arg1: i32) -> (i32, i32, i32) {
    %c0_i32 = arith.constant 0 : i32
    %c0_i32_0 = arith.constant 0 : i32
    return %arg0, %arg1, %c0_i32 : i32, i32, i32
  }
}

module attributes {stable_mosaic.version = 11 : i64} {
  func.func @_conv_block_kernel(%arg0: i32, %arg1: i32, %arg2: memref<1x8x9x16xbf16, #tpu.memory_space<vmem>>, %arg3: memref<1x1x9x16xbf16, #tpu.memory_space<vmem>>, %arg4: memref<3x16x128xbf16, #tpu.memory_space<vmem>>, %arg5: memref<3x8x128xbf16, #tpu.memory_space<vmem>>, %arg6: memref<1x128xf32, #tpu.memory_space<vmem>>, %arg7: memref<1x32x128xbf16, #tpu.memory_space<vmem>>, %arg8: memref<32x128xf32, #tpu.memory_space<vmem>>) attributes {dimension_semantics = [#tpu.dimension_semantics<parallel>, #tpu.dimension_semantics<parallel>], iteration_bounds = array<i64: 2, 1>, scalar_prefetch = 0 : i64, scratch_operands = 1 : i64, tpu.core_type = #tpu.core_type<tc>, window_params = [{transform_indices = @transform_0, window_bounds = array<i64: 1, 8, 9, 16>}, {transform_indices = @transform_1, window_bounds = array<i64: 1, 1, 9, 16>}, {pipeline_mode = #tpu.pipeline_mode<synchronous>, transform_indices = @transform_2, window_bounds = array<i64: 3, 16, 128>}, {pipeline_mode = #tpu.pipeline_mode<synchronous>, transform_indices = @transform_3, window_bounds = array<i64: 3, 8, 128>}, {pipeline_mode = #tpu.pipeline_mode<synchronous>, transform_indices = @transform_4, window_bounds = array<i64: 1, 128>}, {transform_indices = @transform_5, window_bounds = array<i64: 1, 32, 128>}]} {
    %c0 = arith.constant 0 : index
    %c0_0 = arith.constant 0 : index
    %c0_1 = arith.constant 0 : index
    %c0_2 = arith.constant 0 : index
    %0 = vector.load %arg2[%c0, %c0_0, %c0_1, %c0_2] : memref<1x8x9x16xbf16, #tpu.memory_space<vmem>>, vector<1x8x9x16xbf16>
    %1 = vector.shape_cast %0 : vector<1x8x9x16xbf16> to vector<8x9x16xbf16>
    %2 = vector.shape_cast %1 : vector<8x9x16xbf16> to vector<4x2x9x16xbf16>
    %3 = vector.extract_strided_slice %2 {offsets = [0, 0, 0, 0], sizes = [4, 1, 9, 16], strides = [1, 1, 1, 1]} : vector<4x2x9x16xbf16> to vector<4x1x9x16xbf16>
    %4 = vector.shape_cast %3 : vector<4x1x9x16xbf16> to vector<4x9x16xbf16>
    %5 = vector.extract_strided_slice %2 {offsets = [0, 1, 0, 0], sizes = [4, 1, 9, 16], strides = [1, 1, 1, 1]} : vector<4x2x9x16xbf16> to vector<4x1x9x16xbf16>
    %6 = vector.shape_cast %5 : vector<4x1x9x16xbf16> to vector<4x9x16xbf16>
    %7 = vector.extract_strided_slice %2 {offsets = [1, 0, 0, 0], sizes = [3, 1, 9, 16], strides = [1, 1, 1, 1]} : vector<4x2x9x16xbf16> to vector<3x1x9x16xbf16>
    %8 = vector.shape_cast %7 : vector<3x1x9x16xbf16> to vector<3x9x16xbf16>
    %c0_3 = arith.constant 0 : index
    %c0_4 = arith.constant 0 : index
    %c0_5 = arith.constant 0 : index
    %c0_6 = arith.constant 0 : index
    %9 = vector.load %arg3[%c0_3, %c0_4, %c0_5, %c0_6] : memref<1x1x9x16xbf16, #tpu.memory_space<vmem>>, vector<1x1x9x16xbf16>
    %10 = vector.shape_cast %9 : vector<1x1x9x16xbf16> to vector<1x9x16xbf16>
    %11 = tpu.concatenate %8, %10 in 0 : vector<3x9x16xbf16>, vector<1x9x16xbf16> -> vector<4x9x16xbf16>
    %12 = vector.extract_strided_slice %4 {offsets = [0, 0, 0], sizes = [4, 8, 16], strides = [1, 1, 1]} : vector<4x9x16xbf16> to vector<4x8x16xbf16>
    %13 = vector.shape_cast %12 : vector<4x8x16xbf16> to vector<32x16xbf16>
    %14 = vector.extract_strided_slice %4 {offsets = [0, 1, 0], sizes = [4, 8, 8], strides = [1, 1, 1]} : vector<4x9x16xbf16> to vector<4x8x8xbf16>
    %15 = vector.shape_cast %14 : vector<4x8x8xbf16> to vector<32x8xbf16>
    %c0_7 = arith.constant 0 : index
    %c0_8 = arith.constant 0 : index
    %c0_9 = arith.constant 0 : index
    %16 = vector.load %arg4[%c0_7, %c0_8, %c0_9] : memref<3x16x128xbf16, #tpu.memory_space<vmem>>, vector<1x16x128xbf16>
    %17 = vector.shape_cast %16 : vector<1x16x128xbf16> to vector<16x128xbf16>
    %cst = arith.constant dense<0.000000e+00> : vector<32x128xf32>
    %18 = tpu.matmul %13, %17, %cst {dimension_numbers = #tpu.dot_dimension_numbers<[1], [0], [0], [1], [0, 0, 1, 1], [], []>} : vector<32x16xbf16>, vector<16x128xbf16>, vector<32x128xf32> -> vector<32x128xf32>
    %c0_10 = arith.constant 0 : index
    %c0_11 = arith.constant 0 : index
    %c0_12 = arith.constant 0 : index
    %19 = vector.load %arg5[%c0_10, %c0_11, %c0_12] : memref<3x8x128xbf16, #tpu.memory_space<vmem>>, vector<1x8x128xbf16>
    %20 = vector.shape_cast %19 : vector<1x8x128xbf16> to vector<8x128xbf16>
    %cst_13 = arith.constant dense<0.000000e+00> : vector<32x128xf32>
    %21 = tpu.matmul %15, %20, %cst_13 {dimension_numbers = #tpu.dot_dimension_numbers<[1], [0], [0], [1], [0, 0, 1, 1], [], []>} : vector<32x8xbf16>, vector<8x128xbf16>, vector<32x128xf32> -> vector<32x128xf32>
    %22 = arith.addf %18, %21 : vector<32x128xf32>
    %c0_14 = arith.constant 0 : index
    %c0_15 = arith.constant 0 : index
    %23 = vector.load %arg8[%c0_14, %c0_15] : memref<32x128xf32, #tpu.memory_space<vmem>>, vector<32x128xf32>
    tpu.vector_store %arg8[%c0_14, %c0_15], %22 {strides = array<i32>} : memref<32x128xf32, #tpu.memory_space<vmem>>, vector<32x128xf32>,
    %24 = vector.extract_strided_slice %6 {offsets = [0, 0, 0], sizes = [4, 8, 16], strides = [1, 1, 1]} : vector<4x9x16xbf16> to vector<4x8x16xbf16>
    %25 = vector.shape_cast %24 : vector<4x8x16xbf16> to vector<32x16xbf16>
    %26 = vector.extract_strided_slice %6 {offsets = [0, 1, 0], sizes = [4, 8, 8], strides = [1, 1, 1]} : vector<4x9x16xbf16> to vector<4x8x8xbf16>
    %27 = vector.shape_cast %26 : vector<4x8x8xbf16> to vector<32x8xbf16>
    %c1 = arith.constant 1 : index
    %c0_16 = arith.constant 0 : index
    %c0_17 = arith.constant 0 : index
    %28 = vector.load %arg4[%c1, %c0_16, %c0_17] : memref<3x16x128xbf16, #tpu.memory_space<vmem>>, vector<1x16x128xbf16>
    %29 = vector.shape_cast %28 : vector<1x16x128xbf16> to vector<16x128xbf16>
    %cst_18 = arith.constant dense<0.000000e+00> : vector<32x128xf32>
    %30 = tpu.matmul %25, %29, %cst_18 {dimension_numbers = #tpu.dot_dimension_numbers<[1], [0], [0], [1], [0, 0, 1, 1], [], []>} : vector<32x16xbf16>, vector<16x128xbf16>, vector<32x128xf32> -> vector<32x128xf32>
    %c1_19 = arith.constant 1 : index
    %c0_20 = arith.constant 0 : index
    %c0_21 = arith.constant 0 : index
    %31 = vector.load %arg5[%c1_19, %c0_20, %c0_21] : memref<3x8x128xbf16, #tpu.memory_space<vmem>>, vector<1x8x128xbf16>
    %32 = vector.shape_cast %31 : vector<1x8x128xbf16> to vector<8x128xbf16>
    %cst_22 = arith.constant dense<0.000000e+00> : vector<32x128xf32>
    %33 = tpu.matmul %27, %32, %cst_22 {dimension_numbers = #tpu.dot_dimension_numbers<[1], [0], [0], [1], [0, 0, 1, 1], [], []>} : vector<32x8xbf16>, vector<8x128xbf16>, vector<32x128xf32> -> vector<32x128xf32>
    %34 = arith.addf %30, %33 : vector<32x128xf32>
    %c0_23 = arith.constant 0 : index
    %c0_24 = arith.constant 0 : index
    %35 = vector.load %arg8[%c0_23, %c0_24] : memref<32x128xf32, #tpu.memory_space<vmem>>, vector<32x128xf32>
    %36 = arith.addf %35, %34 : vector<32x128xf32>
    %c0_25 = arith.constant 0 : index
    %c0_26 = arith.constant 0 : index
    %37 = vector.load %arg8[%c0_25, %c0_26] : memref<32x128xf32, #tpu.memory_space<vmem>>, vector<32x128xf32>
    tpu.vector_store %arg8[%c0_25, %c0_26], %36 {strides = array<i32>} : memref<32x128xf32, #tpu.memory_space<vmem>>, vector<32x128xf32>,
    %38 = vector.extract_strided_slice %11 {offsets = [0, 0, 0], sizes = [4, 8, 16], strides = [1, 1, 1]} : vector<4x9x16xbf16> to vector<4x8x16xbf16>
    %39 = vector.shape_cast %38 : vector<4x8x16xbf16> to vector<32x16xbf16>
    %40 = vector.extract_strided_slice %11 {offsets = [0, 1, 0], sizes = [4, 8, 8], strides = [1, 1, 1]} : vector<4x9x16xbf16> to vector<4x8x8xbf16>
    %41 = vector.shape_cast %40 : vector<4x8x8xbf16> to vector<32x8xbf16>
    %c2 = arith.constant 2 : index
    %c0_27 = arith.constant 0 : index
    %c0_28 = arith.constant 0 : index
    %42 = vector.load %arg4[%c2, %c0_27, %c0_28] : memref<3x16x128xbf16, #tpu.memory_space<vmem>>, vector<1x16x128xbf16>
    %43 = vector.shape_cast %42 : vector<1x16x128xbf16> to vector<16x128xbf16>
    %cst_29 = arith.constant dense<0.000000e+00> : vector<32x128xf32>
    %44 = tpu.matmul %39, %43, %cst_29 {dimension_numbers = #tpu.dot_dimension_numbers<[1], [0], [0], [1], [0, 0, 1, 1], [], []>} : vector<32x16xbf16>, vector<16x128xbf16>, vector<32x128xf32> -> vector<32x128xf32>
    %c2_30 = arith.constant 2 : index
    %c0_31 = arith.constant 0 : index
    %c0_32 = arith.constant 0 : index
    %45 = vector.load %arg5[%c2_30, %c0_31, %c0_32] : memref<3x8x128xbf16, #tpu.memory_space<vmem>>, vector<1x8x128xbf16>
    %46 = vector.shape_cast %45 : vector<1x8x128xbf16> to vector<8x128xbf16>
    %cst_33 = arith.constant dense<0.000000e+00> : vector<32x128xf32>
    %47 = tpu.matmul %41, %46, %cst_33 {dimension_numbers = #tpu.dot_dimension_numbers<[1], [0], [0], [1], [0, 0, 1, 1], [], []>} : vector<32x8xbf16>, vector<8x128xbf16>, vector<32x128xf32> -> vector<32x128xf32>
    %48 = arith.addf %44, %47 : vector<32x128xf32>
    %c0_34 = arith.constant 0 : index
    %c0_35 = arith.constant 0 : index
    %49 = vector.load %arg8[%c0_34, %c0_35] : memref<32x128xf32, #tpu.memory_space<vmem>>, vector<32x128xf32>
    %50 = arith.addf %49, %48 : vector<32x128xf32>
    %c0_36 = arith.constant 0 : index
    %c0_37 = arith.constant 0 : index
    %51 = vector.load %arg8[%c0_36, %c0_37] : memref<32x128xf32, #tpu.memory_space<vmem>>, vector<32x128xf32>
    tpu.vector_store %arg8[%c0_36, %c0_37], %50 {strides = array<i32>} : memref<32x128xf32, #tpu.memory_space<vmem>>, vector<32x128xf32>,
    %c0_38 = arith.constant 0 : index
    %c0_39 = arith.constant 0 : index
    %52 = vector.load %arg8[%c0_38, %c0_39] : memref<32x128xf32, #tpu.memory_space<vmem>>, vector<32x128xf32>
    %c0_40 = arith.constant 0 : index
    %c0_41 = arith.constant 0 : index
    %53 = vector.load %arg6[%c0_40, %c0_41] : memref<1x128xf32, #tpu.memory_space<vmem>>, vector<1x128xf32>
    %54 = vector.broadcast %53 : vector<1x128xf32> to vector<32x128xf32>
    %55 = arith.addf %52, %54 : vector<32x128xf32>
    %cst_42 = arith.constant 0.000000e+00 : f32
    %56 = vector.broadcast %cst_42 : f32 to vector<32x128xf32>
    %57 = arith.maximumf %55, %56 : vector<32x128xf32>
    %58 = arith.truncf %57 : vector<32x128xf32> to vector<32x128xbf16>
    %c0_43 = arith.constant 0 : index
    %c0_44 = arith.constant 0 : index
    %c0_45 = arith.constant 0 : index
    %59 = vector.load %arg7[%c0_43, %c0_44, %c0_45] : memref<1x32x128xbf16, #tpu.memory_space<vmem>>, vector<1x32x128xbf16>
    %60 = vector.shape_cast %59 : vector<1x32x128xbf16> to vector<32x128xbf16>
    %61 = vector.shape_cast %58 : vector<32x128xbf16> to vector<1x32x128xbf16>
    tpu.vector_store %arg7[%c0_43, %c0_44, %c0_45], %61 {strides = array<i32>} : memref<1x32x128xbf16, #tpu.memory_space<vmem>>, vector<1x32x128xbf16>,
    return
  }
  func.func @transform_0(%arg0: i32, %arg1: i32) -> (i32, i32, i32, i32) {
    %c0_i32 = arith.constant 0 : i32
    %c0_i32_0 = arith.constant 0 : i32
    %c0_i32_1 = arith.constant 0 : i32
    return %arg0, %arg1, %c0_i32, %c0_i32_0 : i32, i32, i32, i32
  }
  func.func @transform_1(%arg0: i32, %arg1: i32) -> (i32, i32, i32, i32) {
    %c1_i32 = arith.constant 1 : i32
    %0 = arith.addi %arg1, %c1_i32 : i32
    %c8_i32 = arith.constant 8 : i32
    %1 = arith.muli %c8_i32, %0 : i32
    %c0_i32 = arith.constant 0 : i32
    %c0_i32_0 = arith.constant 0 : i32
    %c0_i32_1 = arith.constant 0 : i32
    return %arg0, %1, %c0_i32, %c0_i32_0 : i32, i32, i32, i32
  }
  func.func @transform_2(%arg0: i32, %arg1: i32) -> (i32, i32, i32) {
    %c0_i32 = arith.constant 0 : i32
    %c0_i32_0 = arith.constant 0 : i32
    %c0_i32_1 = arith.constant 0 : i32
    %c0_i32_2 = arith.constant 0 : i32
    return %c0_i32, %c0_i32_0, %c0_i32_1 : i32, i32, i32
  }
  func.func @transform_3(%arg0: i32, %arg1: i32) -> (i32, i32, i32) {
    %c0_i32 = arith.constant 0 : i32
    %c0_i32_0 = arith.constant 0 : i32
    %c0_i32_1 = arith.constant 0 : i32
    %c0_i32_2 = arith.constant 0 : i32
    return %c0_i32, %c0_i32_0, %c0_i32_1 : i32, i32, i32
  }
  func.func @transform_4(%arg0: i32, %arg1: i32) -> (i32, i32) {
    %c0_i32 = arith.constant 0 : i32
    %c0_i32_0 = arith.constant 0 : i32
    %c0_i32_1 = arith.constant 0 : i32
    return %c0_i32, %c0_i32_0 : i32, i32
  }
  func.func @transform_5(%arg0: i32, %arg1: i32) -> (i32, i32, i32) {
    %c0_i32 = arith.constant 0 : i32
    %c0_i32_0 = arith.constant 0 : i32
    return %arg0, %arg1, %c0_i32 : i32, i32, i32
  }
}

module attributes {stable_mosaic.version = 11 : i64} {
  func.func @_conv_block_kernel(%arg0: i32, %arg1: i32, %arg2: memref<1x4x9x32xbf16, #tpu.memory_space<vmem>>, %arg3: memref<1x1x9x32xbf16, #tpu.memory_space<vmem>>, %arg4: memref<3x32x128xbf16, #tpu.memory_space<vmem>>, %arg5: memref<3x16x128xbf16, #tpu.memory_space<vmem>>, %arg6: memref<1x128xf32, #tpu.memory_space<vmem>>, %arg7: memref<1x16x128xbf16, #tpu.memory_space<vmem>>, %arg8: memref<16x128xf32, #tpu.memory_space<vmem>>) attributes {dimension_semantics = [#tpu.dimension_semantics<parallel>, #tpu.dimension_semantics<parallel>], iteration_bounds = array<i64: 2, 1>, scalar_prefetch = 0 : i64, scratch_operands = 1 : i64, tpu.core_type = #tpu.core_type<tc>, window_params = [{transform_indices = @transform_0, window_bounds = array<i64: 1, 4, 9, 32>}, {transform_indices = @transform_1, window_bounds = array<i64: 1, 1, 9, 32>}, {pipeline_mode = #tpu.pipeline_mode<synchronous>, transform_indices = @transform_2, window_bounds = array<i64: 3, 32, 128>}, {pipeline_mode = #tpu.pipeline_mode<synchronous>, transform_indices = @transform_3, window_bounds = array<i64: 3, 16, 128>}, {pipeline_mode = #tpu.pipeline_mode<synchronous>, transform_indices = @transform_4, window_bounds = array<i64: 1, 128>}, {transform_indices = @transform_5, window_bounds = array<i64: 1, 16, 128>}]} {
    %c0 = arith.constant 0 : index
    %c0_0 = arith.constant 0 : index
    %c0_1 = arith.constant 0 : index
    %c0_2 = arith.constant 0 : index
    %0 = vector.load %arg2[%c0, %c0_0, %c0_1, %c0_2] : memref<1x4x9x32xbf16, #tpu.memory_space<vmem>>, vector<1x4x9x32xbf16>
    %1 = vector.shape_cast %0 : vector<1x4x9x32xbf16> to vector<4x9x32xbf16>
    %2 = vector.shape_cast %1 : vector<4x9x32xbf16> to vector<2x2x9x32xbf16>
    %3 = vector.extract_strided_slice %2 {offsets = [0, 0, 0, 0], sizes = [2, 1, 9, 32], strides = [1, 1, 1, 1]} : vector<2x2x9x32xbf16> to vector<2x1x9x32xbf16>
    %4 = vector.shape_cast %3 : vector<2x1x9x32xbf16> to vector<2x9x32xbf16>
    %5 = vector.extract_strided_slice %2 {offsets = [0, 1, 0, 0], sizes = [2, 1, 9, 32], strides = [1, 1, 1, 1]} : vector<2x2x9x32xbf16> to vector<2x1x9x32xbf16>
    %6 = vector.shape_cast %5 : vector<2x1x9x32xbf16> to vector<2x9x32xbf16>
    %7 = vector.extract_strided_slice %2 {offsets = [1, 0, 0, 0], sizes = [1, 1, 9, 32], strides = [1, 1, 1, 1]} : vector<2x2x9x32xbf16> to vector<1x1x9x32xbf16>
    %8 = vector.shape_cast %7 : vector<1x1x9x32xbf16> to vector<1x9x32xbf16>
    %c0_3 = arith.constant 0 : index
    %c0_4 = arith.constant 0 : index
    %c0_5 = arith.constant 0 : index
    %c0_6 = arith.constant 0 : index
    %9 = vector.load %arg3[%c0_3, %c0_4, %c0_5, %c0_6] : memref<1x1x9x32xbf16, #tpu.memory_space<vmem>>, vector<1x1x9x32xbf16>
    %10 = vector.shape_cast %9 : vector<1x1x9x32xbf16> to vector<1x9x32xbf16>
    %11 = tpu.concatenate %8, %10 in 0 : vector<1x9x32xbf16>, vector<1x9x32xbf16> -> vector<2x9x32xbf16>
    %12 = vector.extract_strided_slice %4 {offsets = [0, 0, 0], sizes = [2, 8, 32], strides = [1, 1, 1]} : vector<2x9x32xbf16> to vector<2x8x32xbf16>
    %13 = vector.shape_cast %12 : vector<2x8x32xbf16> to vector<16x32xbf16>
    %14 = vector.extract_strided_slice %4 {offsets = [0, 1, 0], sizes = [2, 8, 16], strides = [1, 1, 1]} : vector<2x9x32xbf16> to vector<2x8x16xbf16>
    %15 = vector.shape_cast %14 : vector<2x8x16xbf16> to vector<16x16xbf16>
    %c0_7 = arith.constant 0 : index
    %c0_8 = arith.constant 0 : index
    %c0_9 = arith.constant 0 : index
    %16 = vector.load %arg4[%c0_7, %c0_8, %c0_9] : memref<3x32x128xbf16, #tpu.memory_space<vmem>>, vector<1x32x128xbf16>
    %17 = vector.shape_cast %16 : vector<1x32x128xbf16> to vector<32x128xbf16>
    %cst = arith.constant dense<0.000000e+00> : vector<16x128xf32>
    %18 = tpu.matmul %13, %17, %cst {dimension_numbers = #tpu.dot_dimension_numbers<[1], [0], [0], [1], [0, 0, 1, 1], [], []>} : vector<16x32xbf16>, vector<32x128xbf16>, vector<16x128xf32> -> vector<16x128xf32>
    %c0_10 = arith.constant 0 : index
    %c0_11 = arith.constant 0 : index
    %c0_12 = arith.constant 0 : index
    %19 = vector.load %arg5[%c0_10, %c0_11, %c0_12] : memref<3x16x128xbf16, #tpu.memory_space<vmem>>, vector<1x16x128xbf16>
    %20 = vector.shape_cast %19 : vector<1x16x128xbf16> to vector<16x128xbf16>
    %cst_13 = arith.constant dense<0.000000e+00> : vector<16x128xf32>
    %21 = tpu.matmul %15, %20, %cst_13 {dimension_numbers = #tpu.dot_dimension_numbers<[1], [0], [0], [1], [0, 0, 1, 1], [], []>} : vector<16x16xbf16>, vector<16x128xbf16>, vector<16x128xf32> -> vector<16x128xf32>
    %22 = arith.addf %18, %21 : vector<16x128xf32>
    %c0_14 = arith.constant 0 : index
    %c0_15 = arith.constant 0 : index
    %23 = vector.load %arg8[%c0_14, %c0_15] : memref<16x128xf32, #tpu.memory_space<vmem>>, vector<16x128xf32>
    tpu.vector_store %arg8[%c0_14, %c0_15], %22 {strides = array<i32>} : memref<16x128xf32, #tpu.memory_space<vmem>>, vector<16x128xf32>,
    %24 = vector.extract_strided_slice %6 {offsets = [0, 0, 0], sizes = [2, 8, 32], strides = [1, 1, 1]} : vector<2x9x32xbf16> to vector<2x8x32xbf16>
    %25 = vector.shape_cast %24 : vector<2x8x32xbf16> to vector<16x32xbf16>
    %26 = vector.extract_strided_slice %6 {offsets = [0, 1, 0], sizes = [2, 8, 16], strides = [1, 1, 1]} : vector<2x9x32xbf16> to vector<2x8x16xbf16>
    %27 = vector.shape_cast %26 : vector<2x8x16xbf16> to vector<16x16xbf16>
    %c1 = arith.constant 1 : index
    %c0_16 = arith.constant 0 : index
    %c0_17 = arith.constant 0 : index
    %28 = vector.load %arg4[%c1, %c0_16, %c0_17] : memref<3x32x128xbf16, #tpu.memory_space<vmem>>, vector<1x32x128xbf16>
    %29 = vector.shape_cast %28 : vector<1x32x128xbf16> to vector<32x128xbf16>
    %cst_18 = arith.constant dense<0.000000e+00> : vector<16x128xf32>
    %30 = tpu.matmul %25, %29, %cst_18 {dimension_numbers = #tpu.dot_dimension_numbers<[1], [0], [0], [1], [0, 0, 1, 1], [], []>} : vector<16x32xbf16>, vector<32x128xbf16>, vector<16x128xf32> -> vector<16x128xf32>
    %c1_19 = arith.constant 1 : index
    %c0_20 = arith.constant 0 : index
    %c0_21 = arith.constant 0 : index
    %31 = vector.load %arg5[%c1_19, %c0_20, %c0_21] : memref<3x16x128xbf16, #tpu.memory_space<vmem>>, vector<1x16x128xbf16>
    %32 = vector.shape_cast %31 : vector<1x16x128xbf16> to vector<16x128xbf16>
    %cst_22 = arith.constant dense<0.000000e+00> : vector<16x128xf32>
    %33 = tpu.matmul %27, %32, %cst_22 {dimension_numbers = #tpu.dot_dimension_numbers<[1], [0], [0], [1], [0, 0, 1, 1], [], []>} : vector<16x16xbf16>, vector<16x128xbf16>, vector<16x128xf32> -> vector<16x128xf32>
    %34 = arith.addf %30, %33 : vector<16x128xf32>
    %c0_23 = arith.constant 0 : index
    %c0_24 = arith.constant 0 : index
    %35 = vector.load %arg8[%c0_23, %c0_24] : memref<16x128xf32, #tpu.memory_space<vmem>>, vector<16x128xf32>
    %36 = arith.addf %35, %34 : vector<16x128xf32>
    %c0_25 = arith.constant 0 : index
    %c0_26 = arith.constant 0 : index
    %37 = vector.load %arg8[%c0_25, %c0_26] : memref<16x128xf32, #tpu.memory_space<vmem>>, vector<16x128xf32>
    tpu.vector_store %arg8[%c0_25, %c0_26], %36 {strides = array<i32>} : memref<16x128xf32, #tpu.memory_space<vmem>>, vector<16x128xf32>,
    %38 = vector.extract_strided_slice %11 {offsets = [0, 0, 0], sizes = [2, 8, 32], strides = [1, 1, 1]} : vector<2x9x32xbf16> to vector<2x8x32xbf16>
    %39 = vector.shape_cast %38 : vector<2x8x32xbf16> to vector<16x32xbf16>
    %40 = vector.extract_strided_slice %11 {offsets = [0, 1, 0], sizes = [2, 8, 16], strides = [1, 1, 1]} : vector<2x9x32xbf16> to vector<2x8x16xbf16>
    %41 = vector.shape_cast %40 : vector<2x8x16xbf16> to vector<16x16xbf16>
    %c2 = arith.constant 2 : index
    %c0_27 = arith.constant 0 : index
    %c0_28 = arith.constant 0 : index
    %42 = vector.load %arg4[%c2, %c0_27, %c0_28] : memref<3x32x128xbf16, #tpu.memory_space<vmem>>, vector<1x32x128xbf16>
    %43 = vector.shape_cast %42 : vector<1x32x128xbf16> to vector<32x128xbf16>
    %cst_29 = arith.constant dense<0.000000e+00> : vector<16x128xf32>
    %44 = tpu.matmul %39, %43, %cst_29 {dimension_numbers = #tpu.dot_dimension_numbers<[1], [0], [0], [1], [0, 0, 1, 1], [], []>} : vector<16x32xbf16>, vector<32x128xbf16>, vector<16x128xf32> -> vector<16x128xf32>
    %c2_30 = arith.constant 2 : index
    %c0_31 = arith.constant 0 : index
    %c0_32 = arith.constant 0 : index
    %45 = vector.load %arg5[%c2_30, %c0_31, %c0_32] : memref<3x16x128xbf16, #tpu.memory_space<vmem>>, vector<1x16x128xbf16>
    %46 = vector.shape_cast %45 : vector<1x16x128xbf16> to vector<16x128xbf16>
    %cst_33 = arith.constant dense<0.000000e+00> : vector<16x128xf32>
    %47 = tpu.matmul %41, %46, %cst_33 {dimension_numbers = #tpu.dot_dimension_numbers<[1], [0], [0], [1], [0, 0, 1, 1], [], []>} : vector<16x16xbf16>, vector<16x128xbf16>, vector<16x128xf32> -> vector<16x128xf32>
    %48 = arith.addf %44, %47 : vector<16x128xf32>
    %c0_34 = arith.constant 0 : index
    %c0_35 = arith.constant 0 : index
    %49 = vector.load %arg8[%c0_34, %c0_35] : memref<16x128xf32, #tpu.memory_space<vmem>>, vector<16x128xf32>
    %50 = arith.addf %49, %48 : vector<16x128xf32>
    %c0_36 = arith.constant 0 : index
    %c0_37 = arith.constant 0 : index
    %51 = vector.load %arg8[%c0_36, %c0_37] : memref<16x128xf32, #tpu.memory_space<vmem>>, vector<16x128xf32>
    tpu.vector_store %arg8[%c0_36, %c0_37], %50 {strides = array<i32>} : memref<16x128xf32, #tpu.memory_space<vmem>>, vector<16x128xf32>,
    %c0_38 = arith.constant 0 : index
    %c0_39 = arith.constant 0 : index
    %52 = vector.load %arg8[%c0_38, %c0_39] : memref<16x128xf32, #tpu.memory_space<vmem>>, vector<16x128xf32>
    %c0_40 = arith.constant 0 : index
    %c0_41 = arith.constant 0 : index
    %53 = vector.load %arg6[%c0_40, %c0_41] : memref<1x128xf32, #tpu.memory_space<vmem>>, vector<1x128xf32>
    %54 = vector.broadcast %53 : vector<1x128xf32> to vector<16x128xf32>
    %55 = arith.addf %52, %54 : vector<16x128xf32>
    %cst_42 = arith.constant 0.000000e+00 : f32
    %56 = vector.broadcast %cst_42 : f32 to vector<16x128xf32>
    %57 = arith.maximumf %55, %56 : vector<16x128xf32>
    %58 = arith.truncf %57 : vector<16x128xf32> to vector<16x128xbf16>
    %c0_43 = arith.constant 0 : index
    %c0_44 = arith.constant 0 : index
    %c0_45 = arith.constant 0 : index
    %59 = vector.load %arg7[%c0_43, %c0_44, %c0_45] : memref<1x16x128xbf16, #tpu.memory_space<vmem>>, vector<1x16x128xbf16>
    %60 = vector.shape_cast %59 : vector<1x16x128xbf16> to vector<16x128xbf16>
    %61 = vector.shape_cast %58 : vector<16x128xbf16> to vector<1x16x128xbf16>
    tpu.vector_store %arg7[%c0_43, %c0_44, %c0_45], %61 {strides = array<i32>} : memref<1x16x128xbf16, #tpu.memory_space<vmem>>, vector<1x16x128xbf16>,
    return
  }
  func.func @transform_0(%arg0: i32, %arg1: i32) -> (i32, i32, i32, i32) {
    %c0_i32 = arith.constant 0 : i32
    %c0_i32_0 = arith.constant 0 : i32
    %c0_i32_1 = arith.constant 0 : i32
    return %arg0, %arg1, %c0_i32, %c0_i32_0 : i32, i32, i32, i32
  }
  func.func @transform_1(%arg0: i32, %arg1: i32) -> (i32, i32, i32, i32) {
    %c1_i32 = arith.constant 1 : i32
    %0 = arith.addi %arg1, %c1_i32 : i32
    %c4_i32 = arith.constant 4 : i32
    %1 = arith.muli %c4_i32, %0 : i32
    %c0_i32 = arith.constant 0 : i32
    %c0_i32_0 = arith.constant 0 : i32
    %c0_i32_1 = arith.constant 0 : i32
    return %arg0, %1, %c0_i32, %c0_i32_0 : i32, i32, i32, i32
  }
  func.func @transform_2(%arg0: i32, %arg1: i32) -> (i32, i32, i32) {
    %c0_i32 = arith.constant 0 : i32
    %c0_i32_0 = arith.constant 0 : i32
    %c0_i32_1 = arith.constant 0 : i32
    %c0_i32_2 = arith.constant 0 : i32
    return %c0_i32, %c0_i32_0, %c0_i32_1 : i32, i32, i32
  }
  func.func @transform_3(%arg0: i32, %arg1: i32) -> (i32, i32, i32) {
    %c0_i32 = arith.constant 0 : i32
    %c0_i32_0 = arith.constant 0 : i32
    %c0_i32_1 = arith.constant 0 : i32
    %c0_i32_2 = arith.constant 0 : i32
    return %c0_i32, %c0_i32_0, %c0_i32_1 : i32, i32, i32
  }
  func.func @transform_4(%arg0: i32, %arg1: i32) -> (i32, i32) {
    %c0_i32 = arith.constant 0 : i32
    %c0_i32_0 = arith.constant 0 : i32
    %c0_i32_1 = arith.constant 0 : i32
    return %c0_i32, %c0_i32_0 : i32, i32
  }
  func.func @transform_5(%arg0: i32, %arg1: i32) -> (i32, i32, i32) {
    %c0_i32 = arith.constant 0 : i32
    %c0_i32_0 = arith.constant 0 : i32
    return %arg0, %arg1, %c0_i32 : i32, i32, i32
  }
}

module attributes {stable_mosaic.version = 11 : i64} {
  func.func @_conv_block_kernel(%arg0: i32, %arg1: i32, %arg2: memref<1x2x9x64xbf16, #tpu.memory_space<vmem>>, %arg3: memref<1x1x9x64xbf16, #tpu.memory_space<vmem>>, %arg4: memref<3x64x128xbf16, #tpu.memory_space<vmem>>, %arg5: memref<3x32x128xbf16, #tpu.memory_space<vmem>>, %arg6: memref<1x128xf32, #tpu.memory_space<vmem>>, %arg7: memref<1x8x128xbf16, #tpu.memory_space<vmem>>, %arg8: memref<8x128xf32, #tpu.memory_space<vmem>>) attributes {dimension_semantics = [#tpu.dimension_semantics<parallel>, #tpu.dimension_semantics<parallel>], iteration_bounds = array<i64: 2, 1>, scalar_prefetch = 0 : i64, scratch_operands = 1 : i64, tpu.core_type = #tpu.core_type<tc>, window_params = [{transform_indices = @transform_0, window_bounds = array<i64: 1, 2, 9, 64>}, {transform_indices = @transform_1, window_bounds = array<i64: 1, 1, 9, 64>}, {pipeline_mode = #tpu.pipeline_mode<synchronous>, transform_indices = @transform_2, window_bounds = array<i64: 3, 64, 128>}, {pipeline_mode = #tpu.pipeline_mode<synchronous>, transform_indices = @transform_3, window_bounds = array<i64: 3, 32, 128>}, {pipeline_mode = #tpu.pipeline_mode<synchronous>, transform_indices = @transform_4, window_bounds = array<i64: 1, 128>}, {transform_indices = @transform_5, window_bounds = array<i64: 1, 8, 128>}]} {
    %c0 = arith.constant 0 : index
    %c0_0 = arith.constant 0 : index
    %c0_1 = arith.constant 0 : index
    %c0_2 = arith.constant 0 : index
    %0 = vector.load %arg2[%c0, %c0_0, %c0_1, %c0_2] : memref<1x2x9x64xbf16, #tpu.memory_space<vmem>>, vector<1x2x9x64xbf16>
    %1 = vector.shape_cast %0 : vector<1x2x9x64xbf16> to vector<2x9x64xbf16>
    %2 = vector.shape_cast %1 : vector<2x9x64xbf16> to vector<1x2x9x64xbf16>
    %3 = vector.extract_strided_slice %2 {offsets = [0, 0, 0, 0], sizes = [1, 1, 9, 64], strides = [1, 1, 1, 1]} : vector<1x2x9x64xbf16> to vector<1x1x9x64xbf16>
    %4 = vector.shape_cast %3 : vector<1x1x9x64xbf16> to vector<1x9x64xbf16>
    %5 = vector.extract_strided_slice %2 {offsets = [0, 1, 0, 0], sizes = [1, 1, 9, 64], strides = [1, 1, 1, 1]} : vector<1x2x9x64xbf16> to vector<1x1x9x64xbf16>
    %6 = vector.shape_cast %5 : vector<1x1x9x64xbf16> to vector<1x9x64xbf16>
    %c0_3 = arith.constant 0 : index
    %c0_4 = arith.constant 0 : index
    %c0_5 = arith.constant 0 : index
    %c0_6 = arith.constant 0 : index
    %7 = vector.load %arg3[%c0_3, %c0_4, %c0_5, %c0_6] : memref<1x1x9x64xbf16, #tpu.memory_space<vmem>>, vector<1x1x9x64xbf16>
    %8 = vector.shape_cast %7 : vector<1x1x9x64xbf16> to vector<1x9x64xbf16>
    %9 = vector.extract_strided_slice %4 {offsets = [0, 0, 0], sizes = [1, 8, 64], strides = [1, 1, 1]} : vector<1x9x64xbf16> to vector<1x8x64xbf16>
    %10 = vector.shape_cast %9 : vector<1x8x64xbf16> to vector<8x64xbf16>
    %11 = vector.extract_strided_slice %4 {offsets = [0, 1, 0], sizes = [1, 8, 32], strides = [1, 1, 1]} : vector<1x9x64xbf16> to vector<1x8x32xbf16>
    %12 = vector.shape_cast %11 : vector<1x8x32xbf16> to vector<8x32xbf16>
    %c0_7 = arith.constant 0 : index
    %c0_8 = arith.constant 0 : index
    %c0_9 = arith.constant 0 : index
    %13 = vector.load %arg4[%c0_7, %c0_8, %c0_9] : memref<3x64x128xbf16, #tpu.memory_space<vmem>>, vector<1x64x128xbf16>
    %14 = vector.shape_cast %13 : vector<1x64x128xbf16> to vector<64x128xbf16>
    %cst = arith.constant dense<0.000000e+00> : vector<8x128xf32>
    %15 = tpu.matmul %10, %14, %cst {dimension_numbers = #tpu.dot_dimension_numbers<[1], [0], [0], [1], [0, 0, 1, 1], [], []>} : vector<8x64xbf16>, vector<64x128xbf16>, vector<8x128xf32> -> vector<8x128xf32>
    %c0_10 = arith.constant 0 : index
    %c0_11 = arith.constant 0 : index
    %c0_12 = arith.constant 0 : index
    %16 = vector.load %arg5[%c0_10, %c0_11, %c0_12] : memref<3x32x128xbf16, #tpu.memory_space<vmem>>, vector<1x32x128xbf16>
    %17 = vector.shape_cast %16 : vector<1x32x128xbf16> to vector<32x128xbf16>
    %cst_13 = arith.constant dense<0.000000e+00> : vector<8x128xf32>
    %18 = tpu.matmul %12, %17, %cst_13 {dimension_numbers = #tpu.dot_dimension_numbers<[1], [0], [0], [1], [0, 0, 1, 1], [], []>} : vector<8x32xbf16>, vector<32x128xbf16>, vector<8x128xf32> -> vector<8x128xf32>
    %19 = arith.addf %15, %18 : vector<8x128xf32>
    %c0_14 = arith.constant 0 : index
    %c0_15 = arith.constant 0 : index
    %20 = vector.load %arg8[%c0_14, %c0_15] : memref<8x128xf32, #tpu.memory_space<vmem>>, vector<8x128xf32>
    tpu.vector_store %arg8[%c0_14, %c0_15], %19 {strides = array<i32>} : memref<8x128xf32, #tpu.memory_space<vmem>>, vector<8x128xf32>,
    %21 = vector.extract_strided_slice %6 {offsets = [0, 0, 0], sizes = [1, 8, 64], strides = [1, 1, 1]} : vector<1x9x64xbf16> to vector<1x8x64xbf16>
    %22 = vector.shape_cast %21 : vector<1x8x64xbf16> to vector<8x64xbf16>
    %23 = vector.extract_strided_slice %6 {offsets = [0, 1, 0], sizes = [1, 8, 32], strides = [1, 1, 1]} : vector<1x9x64xbf16> to vector<1x8x32xbf16>
    %24 = vector.shape_cast %23 : vector<1x8x32xbf16> to vector<8x32xbf16>
    %c1 = arith.constant 1 : index
    %c0_16 = arith.constant 0 : index
    %c0_17 = arith.constant 0 : index
    %25 = vector.load %arg4[%c1, %c0_16, %c0_17] : memref<3x64x128xbf16, #tpu.memory_space<vmem>>, vector<1x64x128xbf16>
    %26 = vector.shape_cast %25 : vector<1x64x128xbf16> to vector<64x128xbf16>
    %cst_18 = arith.constant dense<0.000000e+00> : vector<8x128xf32>
    %27 = tpu.matmul %22, %26, %cst_18 {dimension_numbers = #tpu.dot_dimension_numbers<[1], [0], [0], [1], [0, 0, 1, 1], [], []>} : vector<8x64xbf16>, vector<64x128xbf16>, vector<8x128xf32> -> vector<8x128xf32>
    %c1_19 = arith.constant 1 : index
    %c0_20 = arith.constant 0 : index
    %c0_21 = arith.constant 0 : index
    %28 = vector.load %arg5[%c1_19, %c0_20, %c0_21] : memref<3x32x128xbf16, #tpu.memory_space<vmem>>, vector<1x32x128xbf16>
    %29 = vector.shape_cast %28 : vector<1x32x128xbf16> to vector<32x128xbf16>
    %cst_22 = arith.constant dense<0.000000e+00> : vector<8x128xf32>
    %30 = tpu.matmul %24, %29, %cst_22 {dimension_numbers = #tpu.dot_dimension_numbers<[1], [0], [0], [1], [0, 0, 1, 1], [], []>} : vector<8x32xbf16>, vector<32x128xbf16>, vector<8x128xf32> -> vector<8x128xf32>
    %31 = arith.addf %27, %30 : vector<8x128xf32>
    %c0_23 = arith.constant 0 : index
    %c0_24 = arith.constant 0 : index
    %32 = vector.load %arg8[%c0_23, %c0_24] : memref<8x128xf32, #tpu.memory_space<vmem>>, vector<8x128xf32>
    %33 = arith.addf %32, %31 : vector<8x128xf32>
    %c0_25 = arith.constant 0 : index
    %c0_26 = arith.constant 0 : index
    %34 = vector.load %arg8[%c0_25, %c0_26] : memref<8x128xf32, #tpu.memory_space<vmem>>, vector<8x128xf32>
    tpu.vector_store %arg8[%c0_25, %c0_26], %33 {strides = array<i32>} : memref<8x128xf32, #tpu.memory_space<vmem>>, vector<8x128xf32>,
    %35 = vector.extract_strided_slice %8 {offsets = [0, 0, 0], sizes = [1, 8, 64], strides = [1, 1, 1]} : vector<1x9x64xbf16> to vector<1x8x64xbf16>
    %36 = vector.shape_cast %35 : vector<1x8x64xbf16> to vector<8x64xbf16>
    %37 = vector.extract_strided_slice %8 {offsets = [0, 1, 0], sizes = [1, 8, 32], strides = [1, 1, 1]} : vector<1x9x64xbf16> to vector<1x8x32xbf16>
    %38 = vector.shape_cast %37 : vector<1x8x32xbf16> to vector<8x32xbf16>
    %c2 = arith.constant 2 : index
    %c0_27 = arith.constant 0 : index
    %c0_28 = arith.constant 0 : index
    %39 = vector.load %arg4[%c2, %c0_27, %c0_28] : memref<3x64x128xbf16, #tpu.memory_space<vmem>>, vector<1x64x128xbf16>
    %40 = vector.shape_cast %39 : vector<1x64x128xbf16> to vector<64x128xbf16>
    %cst_29 = arith.constant dense<0.000000e+00> : vector<8x128xf32>
    %41 = tpu.matmul %36, %40, %cst_29 {dimension_numbers = #tpu.dot_dimension_numbers<[1], [0], [0], [1], [0, 0, 1, 1], [], []>} : vector<8x64xbf16>, vector<64x128xbf16>, vector<8x128xf32> -> vector<8x128xf32>
    %c2_30 = arith.constant 2 : index
    %c0_31 = arith.constant 0 : index
    %c0_32 = arith.constant 0 : index
    %42 = vector.load %arg5[%c2_30, %c0_31, %c0_32] : memref<3x32x128xbf16, #tpu.memory_space<vmem>>, vector<1x32x128xbf16>
    %43 = vector.shape_cast %42 : vector<1x32x128xbf16> to vector<32x128xbf16>
    %cst_33 = arith.constant dense<0.000000e+00> : vector<8x128xf32>
    %44 = tpu.matmul %38, %43, %cst_33 {dimension_numbers = #tpu.dot_dimension_numbers<[1], [0], [0], [1], [0, 0, 1, 1], [], []>} : vector<8x32xbf16>, vector<32x128xbf16>, vector<8x128xf32> -> vector<8x128xf32>
    %45 = arith.addf %41, %44 : vector<8x128xf32>
    %c0_34 = arith.constant 0 : index
    %c0_35 = arith.constant 0 : index
    %46 = vector.load %arg8[%c0_34, %c0_35] : memref<8x128xf32, #tpu.memory_space<vmem>>, vector<8x128xf32>
    %47 = arith.addf %46, %45 : vector<8x128xf32>
    %c0_36 = arith.constant 0 : index
    %c0_37 = arith.constant 0 : index
    %48 = vector.load %arg8[%c0_36, %c0_37] : memref<8x128xf32, #tpu.memory_space<vmem>>, vector<8x128xf32>
    tpu.vector_store %arg8[%c0_36, %c0_37], %47 {strides = array<i32>} : memref<8x128xf32, #tpu.memory_space<vmem>>, vector<8x128xf32>,
    %c0_38 = arith.constant 0 : index
    %c0_39 = arith.constant 0 : index
    %49 = vector.load %arg8[%c0_38, %c0_39] : memref<8x128xf32, #tpu.memory_space<vmem>>, vector<8x128xf32>
    %c0_40 = arith.constant 0 : index
    %c0_41 = arith.constant 0 : index
    %50 = vector.load %arg6[%c0_40, %c0_41] : memref<1x128xf32, #tpu.memory_space<vmem>>, vector<1x128xf32>
    %51 = vector.broadcast %50 : vector<1x128xf32> to vector<8x128xf32>
    %52 = arith.addf %49, %51 : vector<8x128xf32>
    %cst_42 = arith.constant 0.000000e+00 : f32
    %53 = vector.broadcast %cst_42 : f32 to vector<8x128xf32>
    %54 = arith.maximumf %52, %53 : vector<8x128xf32>
    %55 = arith.truncf %54 : vector<8x128xf32> to vector<8x128xbf16>
    %c0_43 = arith.constant 0 : index
    %c0_44 = arith.constant 0 : index
    %c0_45 = arith.constant 0 : index
    %56 = vector.load %arg7[%c0_43, %c0_44, %c0_45] : memref<1x8x128xbf16, #tpu.memory_space<vmem>>, vector<1x8x128xbf16>
    %57 = vector.shape_cast %56 : vector<1x8x128xbf16> to vector<8x128xbf16>
    %58 = vector.shape_cast %55 : vector<8x128xbf16> to vector<1x8x128xbf16>
    tpu.vector_store %arg7[%c0_43, %c0_44, %c0_45], %58 {strides = array<i32>} : memref<1x8x128xbf16, #tpu.memory_space<vmem>>, vector<1x8x128xbf16>,
    return
  }
  func.func @transform_0(%arg0: i32, %arg1: i32) -> (i32, i32, i32, i32) {
    %c0_i32 = arith.constant 0 : i32
    %c0_i32_0 = arith.constant 0 : i32
    %c0_i32_1 = arith.constant 0 : i32
    return %arg0, %arg1, %c0_i32, %c0_i32_0 : i32, i32, i32, i32
  }
  func.func @transform_1(%arg0: i32, %arg1: i32) -> (i32, i32, i32, i32) {
    %c1_i32 = arith.constant 1 : i32
    %0 = arith.addi %arg1, %c1_i32 : i32
    %c2_i32 = arith.constant 2 : i32
    %1 = arith.muli %c2_i32, %0 : i32
    %c0_i32 = arith.constant 0 : i32
    %c0_i32_0 = arith.constant 0 : i32
    %c0_i32_1 = arith.constant 0 : i32
    return %arg0, %1, %c0_i32, %c0_i32_0 : i32, i32, i32, i32
  }
  func.func @transform_2(%arg0: i32, %arg1: i32) -> (i32, i32, i32) {
    %c0_i32 = arith.constant 0 : i32
    %c0_i32_0 = arith.constant 0 : i32
    %c0_i32_1 = arith.constant 0 : i32
    %c0_i32_2 = arith.constant 0 : i32
    return %c0_i32, %c0_i32_0, %c0_i32_1 : i32, i32, i32
  }
  func.func @transform_3(%arg0: i32, %arg1: i32) -> (i32, i32, i32) {
    %c0_i32 = arith.constant 0 : i32
    %c0_i32_0 = arith.constant 0 : i32
    %c0_i32_1 = arith.constant 0 : i32
    %c0_i32_2 = arith.constant 0 : i32
    return %c0_i32, %c0_i32_0, %c0_i32_1 : i32, i32, i32
  }
  func.func @transform_4(%arg0: i32, %arg1: i32) -> (i32, i32) {
    %c0_i32 = arith.constant 0 : i32
    %c0_i32_0 = arith.constant 0 : i32
    %c0_i32_1 = arith.constant 0 : i32
    return %c0_i32, %c0_i32_0 : i32, i32
  }
  func.func @transform_5(%arg0: i32, %arg1: i32) -> (i32, i32, i32) {
    %c0_i32 = arith.constant 0 : i32
    %c0_i32_0 = arith.constant 0 : i32
    return %arg0, %arg1, %c0_i32 : i32, i32, i32
  }
}

</mosaic_0001>

<bundles_post_ra>
// kernel: backbone_base_forward.5
= control target key start
LH: loop header
LB: loop body
LE: loop exit
PB: predicated region body
PF: predicated region fallthrough
CT: control target
= control target key end

     0   :  { %s1311_s18 = smov 0   ;;  %s1313_s19 = smov 0   ;;  %s1491_s0 = inlined_call_operand.vmem [shape: bf16[2,9,9,16], index: 0, kind: input, shape index: {}, may-alias: {0,1}]   ;;  %s1492_s1 = inlined_call_operand.vmem [shape: bf16[2,9,9,16], index: 1, kind: input, shape index: {}, may-alias: {0,1}]   ;;  %s1493_s2 = inlined_call_operand.vmem [shape: bf16[3,16,128], index: 2, kind: input, shape index: {}]   ;;  %s1494_s3 = inlined_call_operand.vmem [shape: bf16[3,8,128], index: 3, kind: input, shape index: {}]   ;;  %s1495_s4 = inlined_call_operand.vmem [shape: f32[1,128], index: 4, kind: input, shape index: {}]   ;;  %s1496_s5 = inlined_call_operand.vmem [shape: bf16[2,32,128], index: 5, kind: output, shape index: {}]  }
   0x1   :  { %s1315_s20 = smov 0  }
   0x2 LB: > { %s27_s21 = sadd.s32 1, %s1275_s19  ;;  %p1082_p0 = scmp.ge.s32.totalorder %s1279_s20, 1  ;;  %s1279_s20 = sphi %s1315_s20, %s15_s20   ;;  %s1275_s19 = sphi %s1313_s19, %s1500_s19   ;;  %s1271_s18 = sphi %s1311_s18, %s1499_s18  }
   0x3   : > { %p29_p1 = scmp.ge.s32.totalorder %s27_s21, 2  ;;  %p243_p2 = scmp.lt.s32.totalorder %s1279_s20, 3 }
   0x5   : > { %s1502_s21 = smov (%p29_p1, %s27_s21), 0  ;;  %p244_p3 = pnand %p1082_p0, %p243_p2 }
   0x6   : > { %v1249_v0 = vld [vmem:[%s1493_s2 + $0x8] sm:$0xff] (!%p244_p3)   ;;  %p302_p4 = scmp.lt.s32.totalorder (!%p244_p3), %s1271_s18, 1  ;;  %v420_v1 = vld [vmem:[%s1494_s3] sm:$0xf] (!%p244_p3)  ;;  %vm434_vm0 = vcmask (!%p244_p3), 1043456   ;;  %vm503_vm1 = vcmask (!%p244_p3), 130048  }
   0x7   : > { %247 = sbr.rel (%p244_p3) target bundleno = 286 (0x11e), region = 40  ;;  %1181 = vmatprep.subr.bf16.mxu0 (!%p244_p3), %v1249_v0  ;;  %1219 = vmatprep.subr.msk.bf16.mxu1 (!%p244_p3), %vm434_vm0, %v420_v1  ;;  %v436_v2 = vsel (!%p244_p3), %vm434_vm0, %v420_v1, 0  ;;  %v1342_v3 = vld [vmem:[%s1493_s2] sm:$0xff] (!%p244_p3)   ;;  %v1110_v4 = vld [vmem:[%s1494_s3 + $0x8] sm:$0xf] (!%p244_p3)  ;;  %v1374_v16 = vld [vmem:[%s1493_s2 + $0x10] sm:$0xff] (!%p244_p3)  }
   0x8   : > { %1182 = vmatpush3.bf16.msra.mxu0 (!%p244_p3), %v1249_v0  ;;  %1164 = vmatpush3.bf16.msra.mxu1 (!%p244_p3), %v436_v2  ;;  %vm359_vm2 = vsmask.f32 (!%p244_p3), 3328  ;;  %v800_v15 = vsel (!%p244_p3), %vm434_vm0, %v1110_v4, 0  ;;  %vm360_vm3 = vsmask.f32 (!%p244_p3), 7440  ;;  %vm427_vm4 = vcmask (!%p244_p3), 64512  }
   0x9   : > { %1169 = vmatprep.subr.bf16.mxu1 (!%p244_p3), %v1342_v3  ;;  %1221 = vmatprep.subr.msk.bf16.mxu0 (!%p244_p3), %vm434_vm0, %v1110_v4  ;;  %vm1412_vm5 = vmor (!%p244_p3), %vm359_vm2, %vm360_vm3 }
   0xe   : > { %s1504_s18 = smov (!%p302_p4, %s1271_s18), 1 }
   0xf   : > { %s1222_s28 = smul.u32 72, %s1504_s18  ;;  %s1129_s23 = sshll.u32 %s1504_s18, 4 }
  0x10   : > { %s338_s26 = scalar_lea.vmem %s1496_s5, %s1129_s23 }
  0x11   : > { %s1353_s8 = scalar_lea.vmem %s1491_s0, %s1222_s28  ;;  %s1128_s9 = sadd.s32 64, %s1222_s28 }
  0x12   : > { %v343_v5 = vld [vmem:[%s1353_s8 + $0x8] sm:$0xf]  ;;  %v347_v6 = vld [vmem:[%s1353_s8 + $0x18] sm:$0xf]  ;;  %v1364_v10 = vld [vmem:[%s1353_s8] sm:$0xf]  ;;  %s1392_s14 = scalar_lea.vmem %s1492_s1, %s1128_s9 }
  0x13   : > { %v1103_v7 = vcombine.low %v343_v5, %v347_v6  ;;  %v1358_v8 = vld [vmem:[%s1353_s8 + $0x28] sm:$0xf]  ;;  %v1361_v9 = vld [vmem:[%s1353_s8 + $0x38] sm:$0xf]  ;;  %v564_v11 = vshrl.u32 %v343_v5, 16  ;;  %v567_v12 = vshll.u32 %v343_v5, 16 }
  0x14   : > { %v1104_v13 = vcombine.low %v1358_v8, %v1361_v9  ;;  %v342_v14 = vld [vmem:[%s1353_s8 + $0x4] sm:$0x1]  ;;  %v578_v17 = vshrl.u32 %v347_v6, 16  ;;  %v1377_v18 = vld [vmem:[%s1353_s8 + $0x10] sm:$0xf]  ;;  %v363_v20 = vshrl.u32 %v1364_v10, 16 }
  0x15   : > { %1183 = vmatprep.mubr.msk.bf16.mxu0 %vm503_vm1, %v1103_v7  ;;  %v346_v19 = vld [vmem:[%s1353_s8 + $0x14] sm:$0x1]  ;;  %v581_v21 = vshll.u32 %v347_v6, 16  ;;  %v1383_v22 = vld [vmem:[%s1353_s8 + $0x20] sm:$0xf]  ;;  %v1385_v23 = vrot.slane %v564_v11, 4 }
  0x16   : > { %1184 = vmatmul.mubr.msk.bf16.vlgmr.msra.gmra.mrb[0].mxu0 %vm503_vm1, %v1104_v13  ;;  %v1387_v24 = vrot.slane %v567_v12, 5  ;;  %v350_v25 = vld [vmem:[%s1353_s8 + $0x24] sm:$0x1]  ;;  %v365_v26 = vrot.slane %v363_v20, 4  ;;  %v366_v27 = vshll.u32 %v1364_v10, 16  ;;  %v372_v29 = vshll.u32 %v342_v14, 16 }
  0x17   : > { %1188 = vmatpush3.bf16.msra.mxu0 %v800_v15  ;;  %v1397_v28 = vld [vmem:[%s1353_s8 + $0x30] sm:$0xf]  ;;  %v377_v30 = vshrl.u32 %v1377_v18, 16  ;;  %v380_v31 = vshll.u32 %v1377_v18, 16  ;;  %v386_v32 = vshll.u32 %v346_v19, 16  ;;  %v1402_v33 = vrot.slane %v578_v17, 4 }
  0x18   : > { %1193 = vmatprep.subr.bf16.mxu0 %v1374_v16  ;;  %v354_v34 = vld [vmem:[%s1353_s8 + $0x34] sm:$0x1]  ;;  %v368_v35 = vrot.slane %v366_v27, 5  ;;  %v391_v36 = vshrl.u32 %v1383_v22, 16  ;;  %v394_v37 = vshll.u32 %v1383_v22, 16  ;;  %v374_v39 = vrot.slane %v372_v29, 5 }
  0x19   : > { %v1408_v38 = vld [vmem:[%s1392_s14] sm:$0xf]  ;;  %v379_v40 = vrot.slane %v377_v30, 4  ;;  %v382_v41 = vrot.slane %v380_v31, 5  ;;  %v388_v42 = vrot.slane %v386_v32, 5  ;;  %v400_v46 = vshll.u32 %v350_v25, 16 }
  0x1a   : > { %v369_v43 = vor.u32 %v368_v35, %v365_v26  ;;  %v393_v44 = vrot.slane %v391_v36, 4  ;;  %v396_v45 = vrot.slane %v394_v37, 5  ;;  %v405_v49 = vshrl.u32 %v1397_v28, 16  ;;  %v358_v52 = vld [vmem:[%s1392_s14 + $0x4] sm:$0x1] }
  0x1b   : > { %v383_v48 = vor.u32 %v382_v41, %v379_v40  ;;  %v408_v50 = vshll.u32 %v1397_v28, 16  ;;  %v414_v51 = vshll.u32 %v354_v34, 16  ;;  %v402_v55 = vrot.slane %v400_v46, 5  ;;  %v344_v14 = vld [vmem:[%s1353_s8 + $0xc] sm:$0x1] }
  0x1c   : > { %v370_v53 = vrot.slane %v369_v43, 4  ;;  %v397_v54 = vor.u32 %v396_v45, %v393_v44  ;;  %v772_v56 = vshrl.u32 %v1408_v38, 16  ;;  %v583_v57 = vrot.slane %v581_v21, 5  ;;  %v348_v15 = vld [vmem:[%s1353_s8 + $0x1c] sm:$0x1] }
  0x1d   : > { %v384_v58 = vrot.slane %v383_v48, 4  ;;  %v407_v59 = vrot.slane %v405_v49, 4  ;;  %v410_v60 = vrot.slane %v408_v50, 5  ;;  %v775_v0 = vshll.u32 %v1408_v38, 16  ;;  %v1098_v32 = vld [vmem:[%s1494_s3 + $0x4] sm:$0xf] }
  0x1e   : > { %v375_v61 = vsel %vm1412_vm5, %v370_v53, %v374_v39  ;;  %v398_v62 = vrot.slane %v397_v54, 4  ;;  %v774_v63 = vrot.slane %v772_v56, 4  ;;  %v416_v4 = vrot.slane %v414_v51, 5  ;;  %v352_v44 = vld [vmem:[%s1353_s8 + $0x2c] sm:$0x1] }
  0x1f   : > { %v389_v1 = vsel %vm1412_vm5, %v384_v58, %v388_v42  ;;  %v411_v2 = vor.u32 %v410_v60, %v407_v59  ;;  %v781_v5 = vshll.u32 %v358_v52, 16  ;;  %v777_v11 = vrot.slane %v775_v0, 5  ;;  %v356_v45 = vld [vmem:[%s1353_s8 + $0x3c] sm:$0x1] }
  0x20   : > { %v403_v6 = vsel %vm1412_vm5, %v398_v62, %v402_v55  ;;  %v1087_v7 = vcombine.low %v375_v61, %v389_v1  ;;  %v570_v20 = vor.u32 %v1387_v24, %v1385_v23  ;;  %v584_v21 = vor.u32 %v583_v57, %v1402_v33 }
  0x21   : > { %v412_v12 = vrot.slane %v411_v2, 4  ;;  %v1111_v13 = vcombine.low %v389_v1, %v403_v6  ;;  %v778_v17 = vor.u32 %v777_v11, %v774_v63  ;;  %v783_v19 = vrot.slane %v781_v5, 5  ;;  %v1120_v63 = vld [vmem:[%s1495_s4] ss:$0 sm:$0xff] }
  0x22   : > { %1165 = vmatprep.mubr.msk.bf16.mxu1 %vm427_vm4, %v1087_v7  ;;  %v1091_v26 = vcombine.low %v1364_v10, %v1377_v18  ;;  %v573_v30 = vshll.u32 %v344_v14, 16  ;;  %v587_v31 = vshll.u32 %v348_v15, 16  ;;  %v592_v23 = vshrl.u32 %v1358_v8, 16 }
  0x23   : > { %v417_v25 = vsel %vm1412_vm5, %v412_v12, %v416_v4  ;;  %1189 = vmatprep.mubr.msk.bf16.mxu0 %vm427_vm4, %v1111_v13  ;;  %v779_v29 = vrot.slane %v778_v17, 4  ;;  %v595_v24 = vshll.u32 %v1358_v8, 16  ;;  %v1115_v10 = vcombine.low %v1377_v18, %v1383_v22 }
  0x24   : > { %v1088_v27 = vcombine.low %v403_v6, %v417_v25  ;;  %v606_v34 = vshrl.u32 %v1361_v9, 16  ;;  %v609_v35 = vshll.u32 %v1361_v9, 16  ;;  %v571_v8 = vrot.slane %v570_v20, 4 }
  0x25   : > { %v784_v33 = vsel %vm1412_vm5, %v779_v29, %v783_v19  ;;  %v585_v37 = vrot.slane %v584_v21, 4  ;;  %v575_v39 = vrot.slane %v573_v30, 5  ;;  %v589_v40 = vrot.slane %v587_v31, 5 }
  0x26   : > { %1166 = vmatmul.mubr.msk.bf16.vlgmr.msra.gmra.mrb[0].mxu1 %vm427_vm4, %v1088_v27  ;;  %v1112_v36 = vcombine.low %v417_v25, %v784_v33  ;;  %v594_v18 = vrot.slane %v592_v23, 4  ;;  %v597_v41 = vrot.slane %v595_v24, 5  ;;  %v608_v9 = vrot.slane %v606_v34, 4 }
  0x27   : > { %1170 = vmatpush3.bf16.msra.mxu1 %v1342_v3  ;;  %1171 = vmatprep.mubr.msk.bf16.mxu1 %vm503_vm1, %v1091_v26  ;;  %v611_v3 = vrot.slane %v609_v35, 5  ;;  %v576_v42 = vsel %vm1412_vm5, %v571_v8, %v575_v39  ;;  %v590_v43 = vsel %vm1412_vm5, %v585_v37, %v589_v40  ;;  %v1092_v48 = vcombine.low %v1383_v22, %v1397_v28 }
  0x28   : > { %1220 = vmatprep.subr.msk.bf16.mxu1 %vm434_vm0, %v1098_v32  ;;  %1190 = vmatmul.mubr.msk.bf16.vlgmr.msra.gmra.mrb[0].mxu0 %vm427_vm4, %v1112_v36  ;;  %v598_v46 = vor.u32 %v597_v41, %v594_v18  ;;  %v1099_v50 = vcombine.low %v576_v42, %v590_v43  ;;  %v601_v51 = vshll.u32 %v352_v44, 16  ;;  %v637_v52 = vsel %vm434_vm0, %v1098_v32, 0 }
  0x29   : > { %1194 = vmatpush3.bf16.msra.mxu0 %v1374_v16  ;;  %1195 = vmatprep.mubr.msk.bf16.mxu0 %vm503_vm1, %v1115_v10  ;;  %v612_v49 = vor.u32 %v611_v3, %v608_v9  ;;  %v615_v16 = vshll.u32 %v356_v45, 16  ;;  %v1116_v53 = vcombine.low %v1397_v28, %v1408_v38 }
  0x2a   : > { %v599_v54 = vrot.slane %v598_v46, 4  ;;  %v603_v56 = vrot.slane %v601_v51, 5 }
  0x2b   : > { %v613_v55 = vrot.slane %v612_v49, 4  ;;  %v617_v57 = vrot.slane %v615_v16, 5 }
  0x2c   : > { %v604_v22 = vsel %vm1412_vm5, %v599_v54, %v603_v56 }
  0x2d   : > { %v618_v58 = vsel %vm1412_vm5, %v613_v55, %v617_v57 }
  0x2e   : > { %v1100_v59 = vcombine.low %v604_v22, %v618_v58 }
  0x32   : > { %1172 = vmatmul.mubr.msk.bf16.vlgmr.msra.gmra.mrb[0].mxu1 %vm503_vm1, %v1092_v48 }
  0x33   : > { %1176 = vmatpush3.bf16.msra.mxu1 %v637_v52  ;;  %1177 = vmatprep.mubr.msk.bf16.mxu1 %vm427_vm4, %v1099_v50 }
  0x34   : > { %1196 = vmatmul.mubr.msk.bf16.vlgmr.msra.gmra.mrb[0].mxu0 %vm503_vm1, %v1116_v53 }
  0x3e   : > { %1178 = vmatmul.mubr.msk.bf16.vlgmr.msra.gmra.mrb[0].mxu1 %vm427_vm4, %v1100_v59 }
 0x107   : > { %v1197_v28 = vpop.f32.mrb[0].mxu0 }
 0x108   : > { %v901_v38 = vpop.f32.mrb[1].mxu0 }
 0x109   : > { %v1198_v60 = vpop.f32.mrb[2].mxu0 }
 0x10a   : > { %v904_v61 = vpop.f32.mrb[3].mxu0 }
 0x111   : > { %v1179_v62 = vpop.f32.mrb[0].mxu1 }
 0x112   : > { %v1199_v0 = vadd.f32 %v1197_v28, %v1179_v62  ;;  %v673_v1 = vpop.f32.mrb[1].mxu1 }
 0x113   : > { %v1200_v2 = vadd.f32 %v901_v38, %v673_v1  ;;  %v1180_v4 = vpop.f32.mrb[2].mxu1 }
 0x114   : > { %v941_v5 = vadd.f32 %v1199_v0, %v1120_v63  ;;  %v1201_v47 = vadd.f32 %v1198_v60, %v1180_v4  ;;  %v676_v6 = vpop.f32.mrb[3].mxu1 }
 0x115   : > { %v939_v7 = vadd.f32 %v1200_v2, %v1120_v63  ;;  %v1202_v11 = vadd.f32 %v904_v61, %v676_v6 }
 0x116   : > { %v942_v12 = vadd.f32 %v1201_v47, %v1120_v63  ;;  %v945_v14 = vmax.f32 %v941_v5, 0.0 }
 0x117   : > { %v940_v13 = vadd.f32 %v1202_v11, %v1120_v63  ;;  %v943_v17 = vmax.f32 %v939_v7, 0.0 }
 0x118   : > { %v946_v15 = vmax.f32 %v942_v12, 0.0 }
 0x119   : > { %v944_v19 = vmax.f32 %v940_v13, 0.0 }
 0x11a   : > { %v1142_v20 = vpack.c.bf16 %v946_v15, %v945_v14 }
 0x11b   : > { %v1137_v21 = vpack.c.bf16 %v944_v19, %v943_v17 }
 0x11c   : > { %1144 = vst [vmem:[%s338_s26 + $0x8] sm:$0xff] %v1142_v20  }
 0x11d   : > { %1138 = vst [vmem:[%s338_s26] sm:$0xff] %v1137_v21  }
 0x11e PF: > { %s15_s20 = sadd.s32 1, %s1279_s20   ;;  %s1499_s18 = smov %s1275_s19 }
 0x11f   : > { %p12_p5 = scmp.ge.s32.totalorder %s15_s20, 4   ;;  %s1500_s19 = smov %s1502_s21 }
 0x121   :  { %14 = sbr.rel (!%p12_p5) target bundleno = 2 (0x2), region = 77 }

// kernel: backbone_base_forward.4
= control target key start
LH: loop header
LB: loop body
LE: loop exit
PB: predicated region body
PF: predicated region fallthrough
CT: control target
= control target key end

     0   :  { %s1773_s18 = smov 0   ;;  %s1775_s19 = smov 0   ;;  %s2046_s0 = inlined_call_operand.vmem [shape: bf16[2,17,9,16], index: 0, kind: input, shape index: {}, may-alias: {0,1}]   ;;  %s2047_s1 = inlined_call_operand.vmem [shape: bf16[2,17,9,16], index: 1, kind: input, shape index: {}, may-alias: {0,1}]   ;;  %s2048_s2 = inlined_call_operand.vmem [shape: bf16[3,16,128], index: 2, kind: input, shape index: {}]   ;;  %s2049_s3 = inlined_call_operand.vmem [shape: bf16[3,8,128], index: 3, kind: input, shape index: {}]   ;;  %s2050_s4 = inlined_call_operand.vmem [shape: f32[1,128], index: 4, kind: input, shape index: {}]   ;;  %s2051_s5 = inlined_call_operand.vmem [shape: bf16[2,64,128], index: 5, kind: output, shape index: {}]  }
   0x1   :  { %s1777_s20 = smov 0  }
   0x2 LB: > { %s27_s21 = sadd.s32 1, %s1737_s19  ;;  %p1438_p0 = scmp.ge.s32.totalorder %s1741_s20, 1  ;;  %s1741_s20 = sphi %s1777_s20, %s15_s20   ;;  %s1737_s19 = sphi %s1775_s19, %s2055_s19   ;;  %s1733_s18 = sphi %s1773_s18, %s2054_s18  }
   0x3   : > { %p29_p1 = scmp.ge.s32.totalorder %s27_s21, 2  ;;  %p243_p2 = scmp.lt.s32.totalorder %s1741_s20, 3 }
   0x5   : > { %s2057_s21 = smov (%p29_p1, %s27_s21), 0  ;;  %p244_p3 = pnand %p1438_p0, %p243_p2 }
   0x6   : > { %v1705_v0 = vld [vmem:[%s2048_s2 + $0x8] sm:$0xff] (!%p244_p3)   ;;  %p302_p4 = scmp.lt.s32.totalorder (!%p244_p3), %s1733_s18, 1  ;;  %v492_v1 = vld [vmem:[%s2049_s3] sm:$0xf] (!%p244_p3)  ;;  %vm518_vm0 = vcmask (!%p244_p3), 1043456   ;;  %vm613_vm1 = vcmask (!%p244_p3), 130048  }
   0x7   : > { %247 = sbr.rel (%p244_p3) target bundleno = 304 (0x130), region = 40  ;;  %1605 = vmatprep.subr.bf16.mxu0 (!%p244_p3), %v1705_v0  ;;  %1675 = vmatprep.subr.msk.bf16.mxu1 (!%p244_p3), %vm518_vm0, %v492_v1  ;;  %v520_v2 = vsel (!%p244_p3), %vm518_vm0, %v492_v1, 0  ;;  %v1804_v3 = vld [vmem:[%s2048_s2] sm:$0xff] (!%p244_p3)   ;;  %v1482_v4 = vld [vmem:[%s2049_s3 + $0x8] sm:$0xf] (!%p244_p3)  ;;  %v1840_v12 = vld [vmem:[%s2048_s2 + $0x10] sm:$0xff] (!%p244_p3)  }
   0x8   : > { %1606 = vmatpush3.bf16.msra.mxu0 (!%p244_p3), %v1705_v0  ;;  %1576 = vmatpush3.bf16.msra.mxu1 (!%p244_p3), %v520_v2  ;;  %v1072_v11 = vsel (!%p244_p3), %vm518_vm0, %v1482_v4, 0  ;;  %vm375_vm2 = vsmask.f32 (!%p244_p3), 3328  ;;  %vm376_vm3 = vsmask.f32 (!%p244_p3), 7440  ;;  %vm505_vm4 = vcmask (!%p244_p3), 64512  }
   0x9   : > { %1585 = vmatprep.subr.bf16.mxu1 (!%p244_p3), %v1804_v3  ;;  %1677 = vmatprep.subr.msk.bf16.mxu0 (!%p244_p3), %vm518_vm0, %v1482_v4  ;;  %vm1880_vm5 = vmor (!%p244_p3), %vm375_vm2, %vm376_vm3 }
   0xe   : > { %s2059_s18 = smov (!%p302_p4, %s1733_s18), 1 }
   0xf   : > { %s1678_s28 = smul.u32 136, %s2059_s18  ;;  %s1513_s23 = sshll.u32 %s2059_s18, 5 }
  0x10   : > { %s338_s26 = scalar_lea.vmem %s2051_s5, %s1513_s23 }
  0x11   : > { %s1817_s8 = scalar_lea.vmem %s2046_s0, %s1678_s28  ;;  %s1512_s11 = sadd.s32 128, %s1678_s28 }
  0x12   : > { %v1820_v5 = vld [vmem:[%s1817_s8 + $0x8] sm:$0xf]  ;;  %v1823_v6 = vld [vmem:[%s1817_s8 + $0x18] sm:$0xf]  ;;  %v1849_v15 = vld [vmem:[%s1817_s8] sm:$0xf]  ;;  %s327_s16 = scalar_lea.vmem %s2047_s1, %s1512_s11 }
  0x13   : > { %v1471_v7 = vcombine.low %v1820_v5, %v1823_v6  ;;  %v1828_v8 = vld [vmem:[%s1817_s8 + $0x28] sm:$0xf]  ;;  %v1831_v9 = vld [vmem:[%s1817_s8 + $0x38] sm:$0xf]  ;;  %v342_v16 = vld [vmem:[%s1817_s8 + $0x4] sm:$0x1] }
  0x14   : > { %v1472_v10 = vcombine.low %v1828_v8, %v1831_v9  ;;  %v1843_v13 = vld [vmem:[%s1817_s8 + $0x48] sm:$0xf]  ;;  %v1846_v14 = vld [vmem:[%s1817_s8 + $0x58] sm:$0xf]  ;;  %v1854_v17 = vld [vmem:[%s1817_s8 + $0x10] sm:$0xf] }
  0x15   : > { %1607 = vmatprep.mubr.msk.bf16.mxu0 %vm613_vm1, %v1471_v7  ;;  %v1473_v18 = vcombine.low %v1843_v13, %v1846_v14  ;;  %v346_v19 = vld [vmem:[%s1817_s8 + $0x14] sm:$0x1]  ;;  %v1860_v20 = vld [vmem:[%s1817_s8 + $0x20] sm:$0xf]  ;;  %v379_v21 = vshrl.u32 %v1849_v15, 16  ;;  %v382_v23 = vshll.u32 %v1849_v15, 16 }
  0x16   : > { %1608 = vmatmul.mubr.msk.bf16.vlgmr.msra.gmra.mrb[0].mxu0 %vm613_vm1, %v1472_v10  ;;  %v350_v22 = vld [vmem:[%s1817_s8 + $0x24] sm:$0x1]  ;;  %v1868_v24 = vld [vmem:[%s1817_s8 + $0x30] sm:$0xf]  ;;  %v388_v26 = vshll.u32 %v342_v16, 16  ;;  %v393_v27 = vshrl.u32 %v1854_v17, 16 }
  0x17   : > { %1616 = vmatpush3.bf16.msra.mxu0 %v1072_v11  ;;  %1611 = vmatprep.mubr.msk.bf16.mxu0 %vm613_vm1, %v1473_v18  ;;  %v381_v25 = vrot.slane %v379_v21, 4  ;;  %v396_v28 = vshll.u32 %v1854_v17, 16  ;;  %v354_v29 = vld [vmem:[%s1817_s8 + $0x34] sm:$0x1]  ;;  %v384_v30 = vrot.slane %v382_v23, 5  ;;  %v402_v31 = vshll.u32 %v346_v19, 16 }
  0x18   : > { %1625 = vmatprep.subr.bf16.mxu0 %v1840_v12  ;;  %v407_v32 = vshrl.u32 %v1860_v20, 16  ;;  %v410_v33 = vshll.u32 %v1860_v20, 16  ;;  %v1876_v34 = vld [vmem:[%s1817_s8 + $0x40] sm:$0xf]  ;;  %v390_v35 = vrot.slane %v388_v26, 5  ;;  %v395_v36 = vrot.slane %v393_v27, 4 }
  0x19   : > { %v398_v37 = vrot.slane %v396_v28, 5  ;;  %v416_v38 = vshll.u32 %v350_v22, 16  ;;  %v385_v39 = vor.u32 %v384_v30, %v381_v25  ;;  %v404_v40 = vrot.slane %v402_v31, 5  ;;  %v358_v48 = vld [vmem:[%s1817_s8 + $0x44] sm:$0x1] }
  0x1a   : > { %v409_v41 = vrot.slane %v407_v32, 4  ;;  %v412_v42 = vrot.slane %v410_v33, 5  ;;  %v421_v46 = vshrl.u32 %v1868_v24, 16  ;;  %v424_v47 = vshll.u32 %v1868_v24, 16  ;;  %v1896_v2 = vld [vmem:[%s1817_s8 + $0x68] sm:$0xf] }
  0x1b   : > { %v399_v44 = vor.u32 %v398_v37, %v395_v36  ;;  %v418_v45 = vrot.slane %v416_v38, 5  ;;  %v386_v49 = vrot.slane %v385_v39, 4  ;;  %v430_v51 = vshll.u32 %v354_v29, 16  ;;  %v1899_v4 = vld [vmem:[%s1817_s8 + $0x78] sm:$0xf] }
  0x1c   : > { %v413_v50 = vor.u32 %v412_v42, %v409_v41  ;;  %v435_v52 = vshrl.u32 %v1876_v34, 16  ;;  %v423_v54 = vrot.slane %v421_v46, 4  ;;  %v426_v55 = vrot.slane %v424_v47, 5  ;;  %v1902_v7 = vld [vmem:[%s1817_s8 + $0x50] sm:$0xf] }
  0x1d   : > { %v400_v53 = vrot.slane %v399_v44, 4  ;;  %v438_v56 = vshll.u32 %v1876_v34, 16  ;;  %v391_v57 = vsel %vm1880_vm5, %v386_v49, %v390_v35  ;;  %v432_v59 = vrot.slane %v430_v51, 5  ;;  %v362_v22 = vld [vmem:[%s1817_s8 + $0x54] sm:$0x1] }
  0x1e   : > { %v414_v58 = vrot.slane %v413_v50, 4  ;;  %v437_v60 = vrot.slane %v435_v52, 4  ;;  %v427_v62 = vor.u32 %v426_v55, %v423_v54  ;;  %v444_v0 = vshll.u32 %v358_v48, 16  ;;  %v1910_v23 = vld [vmem:[%s1817_s8 + $0x60] sm:$0xf] }
  0x1f   : > { %v405_v61 = vsel %vm1880_vm5, %v400_v53, %v404_v40  ;;  %v440_v63 = vrot.slane %v438_v56, 5  ;;  %v700_v19 = vshrl.u32 %v1820_v5, 16  ;;  %v1474_v27 = vcombine.low %v1896_v2, %v1899_v4  ;;  %v366_v29 = vld [vmem:[%s1817_s8 + $0x64] sm:$0x1]  ;;  %v1930_v36 = vld [vmem:[%s1817_s8 + $0x70] sm:$0xf] }
  0x20   : > { %v1443_v1 = vcombine.low %v391_v57, %v405_v61  ;;  %v419_v10 = vsel %vm1880_vm5, %v414_v58, %v418_v45  ;;  %v428_v11 = vrot.slane %v427_v62, 4  ;;  %v446_v18 = vrot.slane %v444_v0, 5  ;;  %v1921_v30 = vld [vmem:[%s2049_s3 + $0x4] sm:$0xf]  ;;  %v370_v40 = vld [vmem:[%s1817_s8 + $0x74] sm:$0x1] }
  0x21   : > { %v441_v16 = vor.u32 %v440_v63, %v437_v60  ;;  %v1483_v21 = vcombine.low %v405_v61, %v419_v10  ;;  %v449_v28 = vshrl.u32 %v1902_v7, 16  ;;  %v703_v31 = vshll.u32 %v1820_v5, 16  ;;  %1612 = vmatmul.mubr.msk.bf16.gmra.mrb[4].mxu0 %vm613_vm1, %v1474_v27  ;;  %v1941_v46 = vld [vmem:[%s327_s16] sm:$0xf]  ;;  %v374_v51 = vld [vmem:[%s327_s16 + $0x4] sm:$0x1] }
  0x22   : > { %1577 = vmatprep.mubr.msk.bf16.mxu1 %vm505_vm4, %v1443_v1  ;;  %v433_v25 = vsel %vm1880_vm5, %v428_v11, %v432_v59  ;;  %v714_v32 = vshrl.u32 %v1823_v6, 16  ;;  %v452_v35 = vshll.u32 %v1902_v7, 16  ;;  %v458_v39 = vshll.u32 %v362_v22, 16 }
  0x23   : > { %v442_v26 = vrot.slane %v441_v16, 4  ;;  %v1444_v33 = vcombine.low %v419_v10, %v433_v25  ;;  %v451_v38 = vrot.slane %v449_v28, 4  ;;  %v463_v41 = vshrl.u32 %v1910_v23, 16  ;;  %1617 = vmatprep.mubr.msk.bf16.mxu0 %vm505_vm4, %v1483_v21 }
  0x24   : > { %v717_v42 = vshll.u32 %v1823_v6, 16  ;;  %v454_v5 = vrot.slane %v452_v35, 5  ;;  %v466_v44 = vshll.u32 %v1910_v23, 16  ;;  %v472_v45 = vshll.u32 %v366_v29, 16 }
  0x25   : > { %v447_v37 = vsel %vm1880_vm5, %v442_v26, %v446_v18  ;;  %1578 = vmatmul.mubr.msk.bf16.vlgmr.msra.gmra.mrb[0].mxu1 %vm505_vm4, %v1444_v33  ;;  %v465_v48 = vrot.slane %v463_v41, 4  ;;  %v477_v49 = vshrl.u32 %v1930_v36, 16  ;;  %v480_v50 = vshll.u32 %v1930_v36, 16 }
  0x26   : > { %v1484_v47 = vcombine.low %v433_v25, %v447_v37  ;;  %1586 = vmatpush3.bf16.msra.mxu1 %v1804_v3  ;;  %v455_v6 = vor.u32 %v454_v5, %v451_v38  ;;  %v460_v52 = vrot.slane %v458_v39, 5  ;;  %v468_v53 = vrot.slane %v466_v44, 5  ;;  %v348_v5 = vld [vmem:[%s1817_s8 + $0x1c] sm:$0x1] }
  0x27   : > { %v486_v54 = vshll.u32 %v370_v40, 16  ;;  %1676 = vmatprep.subr.msk.bf16.mxu1 %vm518_vm0, %v1921_v30  ;;  %v479_v55 = vrot.slane %v477_v49, 4  ;;  %v482_v56 = vrot.slane %v480_v50, 5  ;;  %v1036_v57 = vshrl.u32 %v1941_v46, 16 }
  0x28   : > { %v1039_v58 = vshll.u32 %v1941_v46, 16  ;;  %v456_v3 = vrot.slane %v455_v6, 4  ;;  %v469_v59 = vor.u32 %v468_v53, %v465_v48  ;;  %v474_v60 = vrot.slane %v472_v45, 5 }
  0x29   : > { %v1045_v61 = vshll.u32 %v374_v51, 16  ;;  %v483_v62 = vor.u32 %v482_v56, %v479_v55  ;;  %v488_v63 = vrot.slane %v486_v54, 5  ;;  %v1038_v0 = vrot.slane %v1036_v57, 4  ;;  %1618 = vmatmul.mubr.msk.bf16.vlgmr.msra.gmra.mrb[0].mxu0 %vm505_vm4, %v1484_v47 }
  0x2a   : > { %v1041_v1 = vrot.slane %v1039_v58, 5  ;;  %v702_v10 = vrot.slane %v700_v19, 4  ;;  %v705_v11 = vrot.slane %v703_v31, 5  ;;  %v461_v16 = vsel %vm1880_vm5, %v456_v3, %v460_v52  ;;  %1626 = vmatpush3.bf16.msra.mxu0 %v1840_v12  ;;  %v352_v3 = vld [vmem:[%s1817_s8 + $0x2c] sm:$0x1] }
  0x2b   : > { %v470_v18 = vrot.slane %v469_v59, 4  ;;  %v1445_v21 = vcombine.low %v447_v37, %v461_v16  ;;  %v484_v22 = vrot.slane %v483_v62, 4  ;;  %v1047_v26 = vrot.slane %v1045_v61, 5  ;;  %v356_v61 = vld [vmem:[%s1817_s8 + $0x3c] sm:$0x1] }
  0x2c   : > { %v1042_v25 = vor.u32 %v1041_v1, %v1038_v0  ;;  %v716_v27 = vrot.slane %v714_v32, 4  ;;  %v719_v28 = vrot.slane %v717_v42, 5  ;;  %v1451_v33 = vcombine.low %v1849_v15, %v1854_v17  ;;  %v344_v42 = vld [vmem:[%s1817_s8 + $0xc] sm:$0x1] }
  0x2d   : > { %v475_v29 = vsel %vm1880_vm5, %v470_v18, %v474_v60  ;;  %1581 = vmatprep.mubr.msk.bf16.mxu1 %vm505_vm4, %v1445_v21  ;;  %v489_v19 = vsel %vm1880_vm5, %v484_v22, %v488_v63  ;;  %v728_v32 = vshrl.u32 %v1828_v8, 16  ;;  %v731_v37 = vshll.u32 %v1828_v8, 16  ;;  %v360_v62 = vld [vmem:[%s1817_s8 + $0x4c] sm:$0x1] }
  0x2e   : > { %v1485_v31 = vcombine.low %v461_v16, %v475_v29  ;;  %v1043_v35 = vrot.slane %v1042_v25, 4  ;;  %v1446_v38 = vcombine.low %v475_v29, %v489_v19  ;;  %v706_v39 = vor.u32 %v705_v11, %v702_v10  ;;  %v364_v10 = vld [vmem:[%s1817_s8 + $0x5c] sm:$0x1] }
  0x2f   : > { %v742_v40 = vshrl.u32 %v1831_v9, 16  ;;  %v745_v12 = vshll.u32 %v1831_v9, 16  ;;  %v720_v44 = vor.u32 %v719_v28, %v716_v27  ;;  %v756_v15 = vshrl.u32 %v1843_v13, 16 }
  0x30   : > { %1621 = vmatprep.mubr.msk.bf16.mxu0 %vm505_vm4, %v1485_v31  ;;  %v1048_v41 = vsel %vm1880_vm5, %v1043_v35, %v1047_v26  ;;  %1582 = vmatmul.mubr.msk.bf16.gmra.mrb[4].mxu1 %vm505_vm4, %v1446_v38  ;;  %v1491_v8 = vcombine.low %v1854_v17, %v1860_v20  ;;  %v759_v47 = vshll.u32 %v1843_v13, 16  ;;  %v770_v9 = vshrl.u32 %v1846_v14, 16 }
  0x31   : > { %v1486_v45 = vcombine.low %v489_v19, %v1048_v41  ;;  %v773_v48 = vshll.u32 %v1846_v14, 16  ;;  %1587 = vmatprep.mubr.msk.bf16.mxu1 %vm613_vm1, %v1451_v33  ;;  %v841_v49 = vsel %vm518_vm0, %v1921_v30, 0  ;;  %v709_v50 = vshll.u32 %v344_v42, 16 }
  0x32   : > { %v723_v51 = vshll.u32 %v348_v5, 16  ;;  %v730_v6 = vrot.slane %v728_v32, 4  ;;  %v733_v52 = vrot.slane %v731_v37, 5  ;;  %v744_v53 = vrot.slane %v742_v40, 4  ;;  %v372_v5 = vld [vmem:[%s1817_s8 + $0x7c] sm:$0x1] }
  0x33   : > { %v747_v17 = vrot.slane %v745_v12, 5  ;;  %1622 = vmatmul.mubr.msk.bf16.gmra.mrb[4].mxu0 %vm505_vm4, %v1486_v45  ;;  %v707_v13 = vrot.slane %v706_v39, 4  ;;  %v721_v54 = vrot.slane %v720_v44, 4  ;;  %v758_v55 = vrot.slane %v756_v15, 4  ;;  %v368_v39 = vld [vmem:[%s1817_s8 + $0x6c] sm:$0x1] }
  0x34   : > { %v1452_v14 = vcombine.low %v1860_v20, %v1868_v24  ;;  %1627 = vmatprep.mubr.msk.bf16.mxu0 %vm613_vm1, %v1491_v8  ;;  %v761_v30 = vrot.slane %v759_v47, 5  ;;  %v772_v56 = vrot.slane %v770_v9, 4  ;;  %v775_v57 = vrot.slane %v773_v48, 5 }
  0x35   : > { %v1453_v58 = vcombine.low %v1876_v34, %v1902_v7  ;;  %v711_v59 = vrot.slane %v709_v50, 5  ;;  %v725_v60 = vrot.slane %v723_v51, 5  ;;  %v734_v63 = vor.u32 %v733_v52, %v730_v6 }
  0x36   : > { %v748_v0 = vor.u32 %v747_v17, %v744_v53  ;;  %v784_v1 = vshrl.u32 %v1896_v2, 16  ;;  %v1492_v20 = vcombine.low %v1868_v24, %v1876_v34  ;;  %v787_v11 = vshll.u32 %v1896_v2, 16 }
  0x37   : > { %v798_v16 = vshrl.u32 %v1899_v4, 16  ;;  %v1493_v18 = vcombine.low %v1902_v7, %v1910_v23  ;;  %v737_v21 = vshll.u32 %v352_v3, 16  ;;  %v801_v22 = vshll.u32 %v1899_v4, 16 }
  0x38   : > { %1588 = vmatmul.mubr.msk.bf16.vlgmr.msra.gmra.mrb[0].mxu1 %vm613_vm1, %v1452_v14  ;;  %v751_v25 = vshll.u32 %v356_v61, 16  ;;  %v762_v26 = vor.u32 %v761_v30, %v758_v55  ;;  %v765_v27 = vshll.u32 %v360_v62, 16  ;;  %v712_v24 = vsel %vm1880_vm5, %v707_v13, %v711_v59 }
  0x39   : > { %1596 = vmatpush3.bf16.msra.mxu1 %v841_v49  ;;  %1591 = vmatprep.mubr.msk.bf16.mxu1 %vm613_vm1, %v1453_v58  ;;  %v726_v34 = vsel %vm1880_vm5, %v721_v54, %v725_v60  ;;  %v776_v2 = vor.u32 %v775_v57, %v772_v56  ;;  %v779_v28 = vshll.u32 %v364_v10, 16  ;;  %v735_v29 = vrot.slane %v734_v63, 4  ;;  %v1500_v60 = vld [vmem:[%s2050_s4] ss:$0 sm:$0xff] }
  0x3a   : > { %v749_v7 = vrot.slane %v748_v0, 4  ;;  %v786_v4 = vrot.slane %v784_v1, 4  ;;  %v789_v19 = vrot.slane %v787_v11, 5  ;;  %v1454_v31 = vcombine.low %v1910_v23, %v1930_v36 }
  0x3b   : > { %1628 = vmatmul.mubr.msk.bf16.vlgmr.msra.gmra.mrb[0].mxu0 %vm613_vm1, %v1492_v20  ;;  %v739_v33 = vrot.slane %v737_v21, 5  ;;  %v800_v35 = vrot.slane %v798_v16, 4  ;;  %v803_v32 = vrot.slane %v801_v22, 5  ;;  %v1463_v37 = vcombine.low %v712_v24, %v726_v34 }
  0x3c   : > { %1631 = vmatprep.mubr.msk.bf16.mxu0 %vm613_vm1, %v1493_v18  ;;  %v753_v38 = vrot.slane %v751_v25, 5  ;;  %v763_v40 = vrot.slane %v762_v26, 4  ;;  %v767_v12 = vrot.slane %v765_v27, 5  ;;  %v777_v41 = vrot.slane %v776_v2, 4 }
  0x3d   : > { %v781_v42 = vrot.slane %v779_v28, 5  ;;  %v1494_v44 = vcombine.low %v1930_v36, %v1941_v46  ;;  %v740_v23 = vsel %vm1880_vm5, %v735_v29, %v739_v33  ;;  %v790_v15 = vor.u32 %v789_v19, %v786_v4 }
  0x3e   : > { %v754_v45 = vsel %vm1880_vm5, %v749_v7, %v753_v38  ;;  %v793_v8 = vshll.u32 %v368_v39, 16  ;;  %v804_v47 = vor.u32 %v803_v32, %v800_v35  ;;  %v807_v9 = vshll.u32 %v372_v5, 16 }
  0x3f   : > { %v768_v48 = vsel %vm1880_vm5, %v763_v40, %v767_v12  ;;  %v782_v36 = vsel %vm1880_vm5, %v777_v41, %v781_v42  ;;  %v1464_v46 = vcombine.low %v740_v23, %v754_v45  ;;  %v791_v49 = vrot.slane %v790_v15, 4 }
  0x40   : > { %1592 = vmatmul.mubr.msk.bf16.gmra.mrb[4].mxu1 %vm613_vm1, %v1454_v31  ;;  %v1465_v50 = vcombine.low %v768_v48, %v782_v36  ;;  %v795_v51 = vrot.slane %v793_v8, 5  ;;  %v805_v6 = vrot.slane %v804_v47, 4  ;;  %v809_v52 = vrot.slane %v807_v9, 5 }
  0x41   : > { %1597 = vmatprep.mubr.msk.bf16.mxu1 %vm505_vm4, %v1463_v37 }
  0x42   : > { %v796_v53 = vsel %vm1880_vm5, %v791_v49, %v795_v51  ;;  %v810_v17 = vsel %vm1880_vm5, %v805_v6, %v809_v52 }
  0x43   : > { %1632 = vmatmul.mubr.msk.bf16.gmra.mrb[4].mxu0 %vm613_vm1, %v1494_v44  ;;  %v1466_v13 = vcombine.low %v796_v53, %v810_v17 }
  0x48   : > { %1598 = vmatmul.mubr.msk.bf16.vlgmr.msra.gmra.mrb[0].mxu1 %vm505_vm4, %v1464_v46 }
  0x49   : > { %1601 = vmatprep.mubr.msk.bf16.mxu1 %vm505_vm4, %v1465_v50 }
  0x50   : > { %1602 = vmatmul.mubr.msk.bf16.gmra.mrb[4].mxu1 %vm505_vm4, %v1466_v13 }
 0x10e   : > { %v1629_v54 = vpop.f32.mrb[0].mxu0 }
 0x10f   : > { %v1197_v55 = vpop.f32.mrb[1].mxu0 }
 0x110   : > { %v1630_v14 = vpop.f32.mrb[2].mxu0 }
 0x111   : > { %v1200_v30 = vpop.f32.mrb[3].mxu0 }
 0x116   : > { %v1633_v56 = vpop.f32.mrb[4].mxu0 }
 0x117   : > { %v1213_v57 = vpop.f32.mrb[5].mxu0 }
 0x118   : > { %v1634_v58 = vpop.f32.mrb[6].mxu0 }
 0x119   : > { %v1216_v3 = vpop.f32.mrb[7].mxu0 }
 0x11b   : > { %v1599_v59 = vpop.f32.mrb[0].mxu1 }
 0x11c   : > { %v1635_v61 = vadd.f32 %v1629_v54, %v1599_v59  ;;  %v877_v43 = vpop.f32.mrb[1].mxu1 }
 0x11d   : > { %v1636_v62 = vadd.f32 %v1197_v55, %v877_v43  ;;  %v1600_v63 = vpop.f32.mrb[2].mxu1 }
 0x11e   : > { %v1269_v0 = vadd.f32 %v1635_v61, %v1500_v60  ;;  %v1637_v1 = vadd.f32 %v1630_v14, %v1600_v63  ;;  %v880_v20 = vpop.f32.mrb[3].mxu1 }
 0x11f   : > { %v1267_v10 = vadd.f32 %v1636_v62, %v1500_v60  ;;  %v1638_v11 = vadd.f32 %v1200_v30, %v880_v20 }
 0x120   : > { %v1270_v16 = vadd.f32 %v1637_v1, %v1500_v60  ;;  %v1277_v21 = vmax.f32 %v1269_v0, 0.0 }
 0x121   : > { %v1268_v18 = vadd.f32 %v1638_v11, %v1500_v60  ;;  %v1275_v25 = vmax.f32 %v1267_v10, 0.0 }
 0x122   : > { %v1278_v22 = vmax.f32 %v1270_v16, 0.0 }
 0x123   : > { %v1276_v26 = vmax.f32 %v1268_v18, 0.0  ;;  %v1603_v27 = vpop.f32.mrb[4].mxu1 }
 0x124   : > { %v1530_v24 = vpack.c.bf16 %v1278_v22, %v1277_v21  ;;  %v1639_v34 = vadd.f32 %v1633_v56, %v1603_v27  ;;  %v893_v2 = vpop.f32.mrb[5].mxu1 }
 0x125   : > { %v1525_v28 = vpack.c.bf16 %v1276_v26, %v1275_v25  ;;  %v1640_v29 = vadd.f32 %v1213_v57, %v893_v2  ;;  %v1604_v7 = vpop.f32.mrb[6].mxu1 }
 0x126   : > { %1542 = vst [vmem:[%s338_s26 + $0x8] sm:$0xff] %v1530_v24   ;;  %v1273_v4 = vadd.f32 %v1639_v34, %v1500_v60  ;;  %v1641_v19 = vadd.f32 %v1634_v58, %v1604_v7  ;;  %v896_v31 = vpop.f32.mrb[7].mxu1 }
 0x127   : > { %1526 = vst [vmem:[%s338_s26] sm:$0xff] %v1525_v28   ;;  %v1271_v33 = vadd.f32 %v1640_v29, %v1500_v60  ;;  %v1642_v35 = vadd.f32 %v1216_v3, %v896_v31 }
 0x128   : > { %v1274_v32 = vadd.f32 %v1641_v19, %v1500_v60  ;;  %v1281_v38 = vmax.f32 %v1273_v4, 0.0 }
 0x129   : > { %v1272_v37 = vadd.f32 %v1642_v35, %v1500_v60  ;;  %v1279_v40 = vmax.f32 %v1271_v33, 0.0 }
 0x12a   : > { %v1282_v39 = vmax.f32 %v1274_v32, 0.0 }
 0x12b   : > { %v1280_v12 = vmax.f32 %v1272_v37, 0.0 }
 0x12c   : > { %v1540_v41 = vpack.c.bf16 %v1282_v39, %v1281_v38 }
 0x12d   : > { %v1535_v42 = vpack.c.bf16 %v1280_v12, %v1279_v40 }
 0x12e   : > { %1544 = vst [vmem:[%s338_s26 + $0x18] sm:$0xff] %v1540_v41  }
 0x12f   : > { %1543 = vst [vmem:[%s338_s26 + $0x10] sm:$0xff] %v1535_v42  }
 0x130 PF: > { %s15_s20 = sadd.s32 1, %s1741_s20   ;;  %s2054_s18 = smov %s1737_s19 }
 0x131   : > { %p12_p5 = scmp.ge.s32.totalorder %s15_s20, 4   ;;  %s2055_s19 = smov %s2057_s21 }
 0x133   :  { %14 = sbr.rel (!%p12_p5) target bundleno = 2 (0x2), region = 77 }

// kernel: backbone_base_forward.6
= control target key start
LH: loop header
LB: loop body
LE: loop exit
PB: predicated region body
PF: predicated region fallthrough
CT: control target
= control target key end

     0   :  { %s1145_s18 = smov 0   ;;  %s1147_s19 = smov 0   ;;  %s1283_s0 = inlined_call_operand.vmem [shape: bf16[2,5,9,32], index: 0, kind: input, shape index: {}, may-alias: {0,1}]   ;;  %s1284_s1 = inlined_call_operand.vmem [shape: bf16[2,5,9,32], index: 1, kind: input, shape index: {}, may-alias: {0,1}]   ;;  %s1285_s2 = inlined_call_operand.vmem [shape: bf16[3,32,128], index: 2, kind: input, shape index: {}]   ;;  %s1286_s3 = inlined_call_operand.vmem [shape: bf16[3,16,128], index: 3, kind: input, shape index: {}]   ;;  %s1287_s4 = inlined_call_operand.vmem [shape: f32[1,128], index: 4, kind: input, shape index: {}]   ;;  %s1288_s5 = inlined_call_operand.vmem [shape: bf16[2,16,128], index: 5, kind: output, shape index: {}]  }
   0x1   :  { %s1149_s20 = smov 0  }
   0x2 LB: > { %s27_s21 = sadd.s32 1, %s1107_s19  ;;  %p939_p0 = scmp.ge.s32.totalorder %s1111_s20, 1  ;;  %s1111_s20 = sphi %s1149_s20, %s15_s20   ;;  %s1107_s19 = sphi %s1147_s19, %s1292_s19   ;;  %s1103_s18 = sphi %s1145_s18, %s1291_s18  }
   0x3   : > { %p29_p1 = scmp.ge.s32.totalorder %s27_s21, 2  ;;  %p243_p2 = scmp.lt.s32.totalorder %s1111_s20, 3 }
   0x5   : > { %s1294_s21 = smov (%p29_p1, %s27_s21), 0  ;;  %p244_p3 = pnand %p939_p0, %p243_p2 }
   0x6   : > { %v1078_v0 = vld [vmem:[%s1285_s2] sm:$0xff] (!%p244_p3)   ;;  %v1113_v1 = vmov (!%p244_p3), 0.0   ;;  %v1079_v2 = vld [vmem:[%s1285_s2 + $0x8] sm:$0xff] (!%p244_p3)   ;;  %vm1114_vm0 = vmmov (!%p244_p3), 0   ;;  %p302_p4 = scmp.lt.s32.totalorder (!%p244_p3), %s1103_s18, 1  ;;  %vm459_vm2 = vcmask (!%p244_p3), 261120  }
   0x7   : > { %247 = sbr.rel (%p244_p3) target bundleno = 271 (0x10f), region = 40  ;;  %1013 = vmatprep.subr.bf16.mxu1 (!%p244_p3), %v1113_v1  ;;  %1007 = vmatprep.subr.bf16.mxu0 (!%p244_p3), %v1113_v1  ;;  %v1080_v3 = vld [vmem:[%s1286_s3] sm:$0xff] (!%p244_p3)   ;;  %vm351_vm1 = vsmask.f32 (!%p244_p3), 3328  ;;  %v1082_v4 = vld [vmem:[%s1285_s2 + $0x10] sm:$0xff] (!%p244_p3)   ;;  %vm397_vm4 = vcmask (!%p244_p3), 130048  }
   0x8   : > { %1014 = vmatpush3.bf16.msra.mxu1 (!%p244_p3), %v1078_v0  ;;  %1017 = vmatprep.mubr.msk.bf16.mxu1 (!%p244_p3), %vm1114_vm0, %v1113_v1  ;;  %vm352_vm3 = vsmask.f32 (!%p244_p3), 7440  ;;  %v1084_v29 = vld [vmem:[%s1285_s2 + $0x18] sm:$0xff] (!%p244_p3)   ;;  %v1083_v46 = vld [vmem:[%s1286_s3 + $0x8] sm:$0xff] (!%p244_p3)   ;;  %v1086_v48 = vld [vmem:[%s1285_s2 + $0x20] sm:$0xff] (!%p244_p3)  }
   0x9   : > { %1015 = vmatprep.subr.bf16.mxu1 (!%p244_p3), %v1113_v1  ;;  %1009 = vmatprep.mubr.msk.bf16.mxu0 (!%p244_p3), %vm1114_vm0, %v1113_v1  ;;  %vm1221_vm5 = vmor (!%p244_p3), %vm351_vm1, %vm352_vm3  ;;  %v1088_v61 = vld [vmem:[%s1285_s2 + $0x28] sm:$0xff] (!%p244_p3)  }
   0xa   : > { %1008 = vmatpush3.bf16.msra.mxu0 (!%p244_p3), %v1080_v3 }
   0xb   : > { %1021 = vmatprep.subr.bf16.mxu0 (!%p244_p3), %v1113_v1 }
   0xc   : > { %1016 = vmatpush3.bf16.msra.mxu1 (!%p244_p3), %v1079_v2 }
   0xd   : > { %1027 = vmatprep.subr.bf16.mxu1 (!%p244_p3), %v1113_v1 }
   0xe   : > { %s1296_s18 = smov (!%p302_p4, %s1103_s18), 1 }
   0xf   : > { %s1049_s28 = smul.u32 40, %s1296_s18  ;;  %s984_s29 = sshll.u32 %s1296_s18, 3 }
  0x10   : > { %s338_s7 = scalar_lea.vmem %s1288_s5, %s984_s29 }
  0x11   : > { %s1187_s6 = scalar_lea.vmem %s1283_s0, %s1049_s28  ;;  %s983_s9 = sadd.s32 32, %s1049_s28 }
  0x12   : > { %v341_v5 = vld [vmem:[%s1187_s6] sm:$0xf]  ;;  %v1194_v6 = vld [vmem:[%s1187_s6 + $0x10] sm:$0xf]  ;;  %s1199_s12 = scalar_lea.vmem %s1284_s1, %s983_s9  ;;  %v342_v7 = vld [vmem:[%s1187_s6 + $0x4] sm:$0x1] }
  0x13   : > { %v355_v8 = vshrl.u32 %v341_v5, 16  ;;  %v358_v9 = vshll.u32 %v341_v5, 16  ;;  %v369_v10 = vshrl.u32 %v1194_v6, 16  ;;  %v372_v11 = vshll.u32 %v1194_v6, 16  ;;  %v346_v12 = vld [vmem:[%s1187_s6 + $0x14] sm:$0x1] }
  0x14   : > { %v947_v13 = vcombine.low %v341_v5, %v1194_v6  ;;  %v1207_v14 = vld [vmem:[%s1199_s12] sm:$0xf]  ;;  %v364_v15 = vshll.u32 %v342_v7, 16  ;;  %v378_v16 = vshll.u32 %v346_v12, 16  ;;  %v343_v21 = vld [vmem:[%s1187_s6 + $0x8] sm:$0xf] }
  0x15   : > { %v357_v17 = vrot.slane %v355_v8, 4  ;;  %v360_v18 = vrot.slane %v358_v9, 5  ;;  %v371_v19 = vrot.slane %v369_v10, 4  ;;  %v374_v20 = vrot.slane %v372_v11, 5  ;;  %v347_v25 = vld [vmem:[%s1187_s6 + $0x18] sm:$0xf] }
  0x16   : > { %1018 = vmatmul.mubr.msk.bf16.vlgmr.msra.gmra.mrb[0].mxu1 %vm459_vm2, %v947_v13  ;;  %v366_v22 = vrot.slane %v364_v15, 5  ;;  %v663_v23 = vshrl.u32 %v1207_v14, 16  ;;  %v666_v24 = vshll.u32 %v1207_v14, 16  ;;  %v380_v28 = vrot.slane %v378_v16, 5  ;;  %v344_v34 = vld [vmem:[%s1187_s6 + $0xc] sm:$0x1] }
  0x17   : > { %1028 = vmatpush3.bf16.msra.mxu1 %v1082_v4  ;;  %v361_v26 = vor.u32 %v360_v18, %v357_v17  ;;  %v375_v27 = vor.u32 %v374_v20, %v371_v19  ;;  %1031 = vmatprep.mubr.msk.bf16.mxu1 %vm1114_vm0, %v1113_v1  ;;  %v507_v30 = vshrl.u32 %v343_v21, 16  ;;  %v510_v32 = vshll.u32 %v343_v21, 16  ;;  %v348_v35 = vld [vmem:[%s1187_s6 + $0x1c] sm:$0x1]  ;;  %v350_v50 = vld [vmem:[%s1199_s12 + $0x4] sm:$0x1] }
  0x18   : > { %1029 = vmatprep.subr.bf16.mxu1 %v1113_v1  ;;  %v521_v33 = vshrl.u32 %v347_v25, 16  ;;  %v665_v38 = vrot.slane %v663_v23, 4  ;;  %v668_v40 = vrot.slane %v666_v24, 5  ;;  %v524_v43 = vshll.u32 %v347_v25, 16  ;;  %v1087_v7 = vld [vmem:[%s1286_s3 + $0x10] sm:$0xff]  }
  0x19   : > { %v362_v36 = vrot.slane %v361_v26, 4  ;;  %v376_v37 = vrot.slane %v375_v27, 4  ;;  %v509_v39 = vrot.slane %v507_v30, 4  ;;  %v512_v41 = vrot.slane %v510_v32, 5 }
  0x1a   : > { %v523_v42 = vrot.slane %v521_v33, 4  ;;  %v960_v47 = vcombine.low %v343_v21, %v347_v25  ;;  %v516_v49 = vshll.u32 %v344_v34, 16  ;;  %v526_v52 = vrot.slane %v524_v43, 5 }
  0x1b   : > { %v367_v44 = vsel %vm1221_vm5, %v362_v36, %v366_v22  ;;  %v381_v45 = vsel %vm1221_vm5, %v376_v37, %v380_v28  ;;  %1030 = vmatpush3.bf16.msra.mxu1 %v1084_v29  ;;  %v513_v53 = vor.u32 %v512_v41, %v509_v39  ;;  %v530_v55 = vshll.u32 %v348_v35, 16  ;;  %v977_v37 = vld [vmem:[%s1287_s4] ss:$0 sm:$0xff] }
  0x1c   : > { %v944_v51 = vcombine.low %v367_v44, %v381_v45  ;;  %1041 = vmatprep.subr.bf16.mxu1 %v1113_v1  ;;  %v518_v54 = vrot.slane %v516_v49, 5  ;;  %v527_v57 = vor.u32 %v526_v52, %v523_v42  ;;  %v669_v58 = vor.u32 %v668_v40, %v665_v38 }
  0x1d   : > { %v514_v56 = vrot.slane %v513_v53, 4  ;;  %v672_v59 = vshll.u32 %v350_v50, 16  ;;  %v532_v60 = vrot.slane %v530_v55, 5  ;;  %v973_v2 = vcombine.low %v1194_v6, %v1207_v14 }
  0x1e   : > { %1010 = vmatmul.mubr.msk.bf16.vlgmr.msra.gmra.mrb[0].mxu0 %vm397_vm4, %v944_v51  ;;  %1032 = vmatmul.mubr.msk.bf16.vlgmr.msra.gmra.mrb[4].mxu1 %vm459_vm2, %v960_v47  ;;  %v528_v63 = vrot.slane %v527_v57, 4  ;;  %v670_v3 = vrot.slane %v669_v58, 4 }
  0x1f   : > { %1022 = vmatpush3.bf16.msra.mxu0 %v1083_v46  ;;  %1042 = vmatpush3.bf16.msra.mxu1 %v1086_v48  ;;  %v519_v62 = vsel %vm1221_vm5, %v514_v56, %v518_v54  ;;  %v674_v4 = vrot.slane %v672_v59, 5 }
  0x20   : > { %1023 = vmatprep.mubr.msk.bf16.mxu0 %vm1114_vm0, %v1113_v1  ;;  %1035 = vmatprep.subr.bf16.mxu0 %v1113_v1  ;;  %v533_v0 = vsel %vm1221_vm5, %v528_v63, %v532_v60 }
  0x21   : > { %1043 = vmatprep.subr.bf16.mxu1 %v1113_v1  ;;  %1045 = vmatprep.mubr.msk.bf16.mxu1 %vm1114_vm0, %v1113_v1  ;;  %v957_v5 = vcombine.low %v519_v62, %v533_v0  ;;  %v675_v8 = vsel %vm1221_vm5, %v670_v3, %v674_v4 }
  0x22   : > { %v970_v6 = vcombine.low %v381_v45, %v675_v8 }
  0x23   : > { %1044 = vmatpush3.bf16.msra.mxu1 %v1088_v61 }
  0x26   : > { %1024 = vmatmul.mubr.msk.bf16.vlgmr.msra.gmra.mrb[4].mxu0 %vm397_vm4, %v957_v5  ;;  %1046 = vmatmul.mubr.msk.bf16.vlgmr.msra.gmra.mrb[8].mxu1 %vm459_vm2, %v973_v2 }
  0x27   : > { %1036 = vmatpush3.bf16.msra.mxu0 %v1087_v7  ;;  %1037 = vmatprep.mubr.msk.bf16.mxu0 %vm1114_vm0, %v1113_v1 }
  0x2e   : > { %1038 = vmatmul.mubr.msk.bf16.vlgmr.msra.gmra.mrb[8].mxu0 %vm397_vm4, %v970_v6 }
  0xe9   : > { %v497_v9 = vpop.f32.mrb[0].mxu1 }
  0xea   : > { %v1019_v10 = vpop.f32.mrb[1].mxu1 }
  0xeb   : > { %v500_v11 = vpop.f32.mrb[2].mxu1 }
  0xec   : > { %v1020_v12 = vpop.f32.mrb[3].mxu1 }
  0xf1   : > { %v435_v13 = vpop.f32.mrb[0].mxu0  ;;  %v649_v14 = vpop.f32.mrb[4].mxu1 }
  0xf2   : > { %v498_v15 = vadd.f32 %v497_v9, %v435_v13  ;;  %v1011_v16 = vpop.f32.mrb[1].mxu0  ;;  %v1033_v17 = vpop.f32.mrb[5].mxu1 }
  0xf3   : > { %v438_v18 = vpop.f32.mrb[2].mxu0  ;;  %v652_v19 = vpop.f32.mrb[6].mxu1 }
  0xf4   : > { %v501_v20 = vadd.f32 %v500_v11, %v438_v18  ;;  %v1012_v21 = vpop.f32.mrb[3].mxu0  ;;  %v1034_v22 = vpop.f32.mrb[7].mxu1 }
  0xf9   : > { %v588_v23 = vpop.f32.mrb[4].mxu0  ;;  %v788_v24 = vpop.f32.mrb[8].mxu1 }
  0xfa   : > { %v650_v1 = vadd.f32 %v649_v14, %v588_v23  ;;  %v1025_v25 = vpop.f32.mrb[5].mxu0  ;;  %v1047_v26 = vpop.f32.mrb[9].mxu1 }
  0xfb   : > { %v591_v27 = vpop.f32.mrb[6].mxu0  ;;  %v791_v28 = vpop.f32.mrb[10].mxu1 }
  0xfc   : > { %v658_v29 = vadd.f32 %v650_v1, %v498_v15  ;;  %v653_v30 = vadd.f32 %v652_v19, %v591_v27  ;;  %v1026_v31 = vpop.f32.mrb[7].mxu0  ;;  %v1048_v32 = vpop.f32.mrb[11].mxu1 }
  0xfe   : > { %v659_v33 = vadd.f32 %v653_v30, %v501_v20 }
 0x101   : > { %v729_v34 = vpop.f32.mrb[8].mxu0 }
 0x102   : > { %v789_v35 = vadd.f32 %v788_v24, %v729_v34  ;;  %v1039_v36 = vpop.f32.mrb[9].mxu0 }
 0x103   : > { %v732_v38 = vpop.f32.mrb[10].mxu0 }
 0x104   : > { %v797_v39 = vadd.f32 %v789_v35, %v658_v29  ;;  %v792_v40 = vadd.f32 %v791_v28, %v732_v38  ;;  %v1040_v41 = vpop.f32.mrb[11].mxu0 }
 0x106   : > { %v810_v42 = vadd.f32 %v977_v37, %v797_v39  ;;  %v798_v43 = vadd.f32 %v792_v40, %v659_v33 }
 0x108   : > { %v811_v44 = vadd.f32 %v977_v37, %v798_v43  ;;  %v812_v45 = vmax.f32 %v810_v42, 0.0 }
 0x10a   : > { %v813_v46 = vmax.f32 %v811_v44, 0.0 }
 0x10c   : > { %v990_v47 = vpack.c.bf16 %v813_v46, %v812_v45 }
 0x10e   : > { %991 = vst [vmem:[%s338_s7] sm:$0xff] %v990_v47  }
 0x10f PF: > { %s15_s20 = sadd.s32 1, %s1111_s20   ;;  %s1291_s18 = smov %s1107_s19 }
 0x110   : > { %p12_p5 = scmp.ge.s32.totalorder %s15_s20, 4   ;;  %s1292_s19 = smov %s1294_s21 }
 0x112   :  { %14 = sbr.rel (!%p12_p5) target bundleno = 2 (0x2), region = 77 }

// kernel: backbone_base_forward.7
= control target key start
LH: loop header
LB: loop body
LE: loop exit
PB: predicated region body
PF: predicated region fallthrough
CT: control target
= control target key end

     0   :  { %s1160_s18 = smov 0   ;;  %s1162_s19 = smov 0   ;;  %s1297_s0 = inlined_call_operand.vmem [shape: bf16[2,3,9,64], index: 0, kind: input, shape index: {}, may-alias: {0,1}]   ;;  %s1298_s1 = inlined_call_operand.vmem [shape: bf16[2,3,9,64], index: 1, kind: input, shape index: {}, may-alias: {0,1}]   ;;  %s1299_s2 = inlined_call_operand.vmem [shape: bf16[3,64,128], index: 2, kind: input, shape index: {}]   ;;  %s1300_s3 = inlined_call_operand.vmem [shape: bf16[3,32,128], index: 3, kind: input, shape index: {}]   ;;  %s1301_s4 = inlined_call_operand.vmem [shape: f32[1,128], index: 4, kind: input, shape index: {}]   ;;  %s1302_s5 = inlined_call_operand.vmem [shape: bf16[2,8,128], index: 5, kind: output, shape index: {}]  }
   0x1   :  { %s1164_s20 = smov 0  }
   0x2 LB: > { %s27_s21 = sadd.s32 1, %s1122_s19  ;;  %p910_p0 = scmp.ge.s32.totalorder %s1126_s20, 1  ;;  %s1126_s20 = sphi %s1164_s20, %s15_s20   ;;  %s1122_s19 = sphi %s1162_s19, %s1304_s19   ;;  %s1118_s18 = sphi %s1160_s18, %s1303_s18  }
   0x3   : > { %p29_p1 = scmp.ge.s32.totalorder %s27_s21, 2  ;;  %p243_p2 = scmp.lt.s32.totalorder %s1126_s20, 3 }
   0x5   : > { %s1306_s21 = smov (%p29_p1, %s27_s21), 0  ;;  %p244_p3 = pnand %p910_p0, %p243_p2 }
   0x6   : > { %v1083_v0 = vld [vmem:[%s1299_s2] sm:$0xff] (!%p244_p3)   ;;  %v1128_v1 = vmov (!%p244_p3), 0.0   ;;  %v1084_v2 = vld [vmem:[%s1299_s2 + $0x8] sm:$0xff] (!%p244_p3)   ;;  %vm1129_vm0 = vmmov (!%p244_p3), 0   ;;  %p300_p4 = scmp.lt.s32.totalorder (!%p244_p3), %s1118_s18, 1  ;;  %v1086_v5 = vld [vmem:[%s1299_s2 + $0x10] sm:$0xff] (!%p244_p3)  }
   0x7   : > { %247 = sbr.rel (%p244_p3) target bundleno = 276 (0x114), region = 40  ;;  %1002 = vmatprep.subr.bf16.mxu1 (!%p244_p3), %v1128_v1  ;;  %994 = vmatprep.subr.bf16.mxu0 (!%p244_p3), %v1128_v1  ;;  %v1085_v3 = vld [vmem:[%s1300_s3] sm:$0xff] (!%p244_p3)   ;;  %v1087_v4 = vld [vmem:[%s1300_s3 + $0x8] sm:$0xff] (!%p244_p3)   ;;  %v1088_v8 = vld [vmem:[%s1299_s2 + $0x18] sm:$0xff] (!%p244_p3)   ;;  %vm378_vm1 = vcmask (!%p244_p3), 261120   ;;  %vm446_vm2 = vcmask (!%p244_p3), 523264  }
   0x8   : > { %1003 = vmatpush3.bf16.msra.mxu1 (!%p244_p3), %v1083_v0  ;;  %998 = vmatprep.mubr.msk.bf16.mxu0 (!%p244_p3), %vm1129_vm0, %v1128_v1  ;;  %v1090_v18 = vld [vmem:[%s1300_s3 + $0x10] sm:$0xff] (!%p244_p3)   ;;  %v1091_v19 = vld [vmem:[%s1300_s3 + $0x20] sm:$0xff] (!%p244_p3)   ;;  %v1093_v23 = vld [vmem:[%s1300_s3 + $0x28] sm:$0xff] (!%p244_p3)  }
   0x9   : > { %1004 = vmatprep.subr.bf16.mxu1 (!%p244_p3), %v1128_v1  ;;  %1010 = vmatprep.mubr.msk.bf16.mxu1 (!%p244_p3), %vm1129_vm0, %v1128_v1  ;;  %v1092_v29 = vld [vmem:[%s1300_s3 + $0x18] sm:$0xff] (!%p244_p3)   ;;  %v1097_v32 = vld [vmem:[%s1299_s2 + $0x40] sm:$0xff] (!%p244_p3)   ;;  %v1099_v34 = vld [vmem:[%s1299_s2 + $0x48] sm:$0xff] (!%p244_p3)  }
   0xa   : > { %995 = vmatpush3.bf16.msra.mxu0 (!%p244_p3), %v1085_v3  ;;  %v1095_v33 = vld [vmem:[%s1299_s2 + $0x20] sm:$0xff] (!%p244_p3)   ;;  %v1098_v35 = vld [vmem:[%s1299_s2 + $0x28] sm:$0xff] (!%p244_p3)   ;;  %v1101_v36 = vld [vmem:[%s1299_s2 + $0x50] sm:$0xff] (!%p244_p3)  }
   0xb   : > { %996 = vmatprep.subr.bf16.mxu0 (!%p244_p3), %v1128_v1  ;;  %v1100_v37 = vld [vmem:[%s1299_s2 + $0x30] sm:$0xff] (!%p244_p3)   ;;  %v1103_v38 = vld [vmem:[%s1299_s2 + $0x58] sm:$0xff] (!%p244_p3)  }
   0xc   : > { %1005 = vmatpush3.bf16.msra.mxu1 (!%p244_p3), %v1084_v2  ;;  %v1102_v39 = vld [vmem:[%s1299_s2 + $0x38] sm:$0xff] (!%p244_p3)  }
   0xd   : > { %1006 = vmatprep.subr.bf16.mxu1 (!%p244_p3), %v1128_v1 }
   0xe   : > { %s1308_s18 = smov (!%p300_p4, %s1118_s18), 1  ;;  %997 = vmatpush3.bf16.msra.mxu0 %v1087_v4  ;;  %v965_v4 = vld [vmem:[%s1301_s4] ss:$0 sm:$0xff] }
   0xf   : > { %s1054_s7 = smul.u32 24, %s1308_s18  ;;  %1014 = vmatprep.subr.bf16.mxu0 %v1128_v1  ;;  %s913_s26 = sshll.u32 %s1308_s18, 2 }
  0x10   : > { %1007 = vmatpush3.bf16.msra.mxu1 %v1086_v5  ;;  %s334_s29 = scalar_lea.vmem %s1302_s5, %s913_s26 }
  0x11   : > { %s308_s10 = scalar_lea.vmem %s1297_s0, %s1054_s7  ;;  %s969_s11 = sadd.s32 16, %s1054_s7  ;;  %1008 = vmatprep.subr.bf16.mxu1 %v1128_v1 }
  0x12   : > { %v336_v6 = vld [vmem:[%s308_s10] sm:$0xf]  ;;  %v337_v7 = vld [vmem:[%s308_s10 + $0x4] sm:$0x1]  ;;  %s325_s14 = scalar_lea.vmem %s1298_s1, %s969_s11  ;;  %v1215_v10 = vld [vmem:[%s308_s10 + $0x8] sm:$0xf] }
  0x13   : > { %v914_v9 = vcombine.low %v336_v6, %v337_v7  ;;  %v339_v11 = vld [vmem:[%s308_s10 + $0xc] sm:$0x1]  ;;  %v340_v15 = vld [vmem:[%s325_s14] sm:$0xf]  ;;  %v341_v16 = vld [vmem:[%s325_s14 + $0x4] sm:$0x1] }
  0x14   : > { %v935_v14 = vcombine.low %v1215_v10, %v339_v11  ;;  %1009 = vmatpush3.bf16.msra.mxu1 %v1088_v8  ;;  %v956_v21 = vcombine.low %v340_v15, %v341_v16 }
  0x15   : > { %v360_v12 = vshrl.u32 %v914_v9, 16  ;;  %v362_v13 = vshll.u32 %v914_v9, 16  ;;  %1034 = vmatprep.subr.bf16.mxu1 %v1128_v1 }
  0x16   : > { %v513_v20 = vshll.u32 %v935_v14, 16  ;;  %v664_v24 = vshll.u32 %v956_v21, 16  ;;  %v511_v25 = vshrl.u32 %v935_v14, 16  ;;  %v662_v26 = vshrl.u32 %v956_v21, 16 }
  0x17   : > { %v364_v17 = vrot.slane %v362_v13, 1  ;;  %1011 = vmatmul.mubr.msk.bf16.vlgmr.msra.gmra.mrb[0].mxu1 %vm446_vm2, %v336_v6 }
  0x18   : > { %1035 = vmatpush3.bf16.msra.mxu1 %v1091_v19  ;;  %v515_v27 = vrot.slane %v513_v20, 1  ;;  %v666_v28 = vrot.slane %v664_v24, 1  ;;  %1038 = vmatprep.mubr.msk.bf16.mxu1 %vm1129_vm0, %v1128_v1 }
  0x19   : > { %v365_v22 = vor.u32 %v364_v17, %v360_v12  ;;  %1036 = vmatprep.subr.bf16.mxu1 %v1128_v1 }
  0x1a   : > { %v667_v30 = vor.u32 %v666_v28, %v662_v26  ;;  %v516_v31 = vor.u32 %v515_v27, %v511_v25 }
  0x1b   : > { %999 = vmatmul.mubr.msk.bf16.vlgmr.msra.gmra.mrb[0].mxu0 %vm378_vm1, %v365_v22 }
  0x1c   : > { %1015 = vmatpush3.bf16.msra.mxu0 %v1090_v18  ;;  %1018 = vmatprep.mubr.msk.bf16.mxu0 %vm1129_vm0, %v1128_v1 }
  0x1d   : > { %1016 = vmatprep.subr.bf16.mxu0 %v1128_v1  ;;  %1037 = vmatpush3.bf16.msra.mxu1 %v1093_v23 }
  0x1e   : > { %1042 = vmatprep.subr.bf16.mxu1 %v1128_v1 }
  0x20   : > { %1017 = vmatpush3.bf16.msra.mxu0 %v1092_v29  ;;  %1039 = vmatmul.mubr.msk.bf16.vlgmr.msra.gmra.mrb[4].mxu1 %vm378_vm1, %v667_v30 }
  0x21   : > { %1022 = vmatprep.subr.bf16.mxu0 %v1128_v1  ;;  %1043 = vmatpush3.bf16.msra.mxu1 %v1097_v32 }
  0x22   : > { %1044 = vmatprep.subr.bf16.mxu1 %v1128_v1  ;;  %1050 = vmatprep.mubr.msk.bf16.mxu1 %vm1129_vm0, %v1128_v1 }
  0x23   : > { %1019 = vmatmul.mubr.msk.bf16.vlgmr.msra.gmra.mrb[4].mxu0 %vm378_vm1, %v516_v31 }
  0x24   : > { %1023 = vmatpush3.bf16.msra.mxu0 %v1095_v33  ;;  %1030 = vmatprep.mubr.msk.bf16.mxu0 %vm1129_vm0, %v1128_v1 }
  0x25   : > { %1024 = vmatprep.subr.bf16.mxu0 %v1128_v1  ;;  %1045 = vmatpush3.bf16.msra.mxu1 %v1099_v34 }
  0x26   : > { %1046 = vmatprep.subr.bf16.mxu1 %v1128_v1 }
  0x28   : > { %1025 = vmatpush3.bf16.msra.mxu0 %v1098_v35 }
  0x29   : > { %1026 = vmatprep.subr.bf16.mxu0 %v1128_v1  ;;  %1047 = vmatpush3.bf16.msra.mxu1 %v1101_v36 }
  0x2a   : > { %1048 = vmatprep.subr.bf16.mxu1 %v1128_v1 }
  0x2c   : > { %1027 = vmatpush3.bf16.msra.mxu0 %v1100_v37 }
  0x2d   : > { %1028 = vmatprep.subr.bf16.mxu0 %v1128_v1  ;;  %1049 = vmatpush3.bf16.msra.mxu1 %v1103_v38 }
  0x30   : > { %1029 = vmatpush3.bf16.msra.mxu0 %v1102_v39  ;;  %1051 = vmatmul.mubr.msk.bf16.vlgmr.msra.gmra.mrb[8].mxu1 %vm446_vm2, %v340_v15 }
  0x33   : > { %1031 = vmatmul.mubr.msk.bf16.vlgmr.msra.gmra.mrb[8].mxu0 %vm446_vm2, %v1215_v10 }
  0xea   : > { %v484_v40 = vpop.f32.mrb[0].mxu1 }
  0xeb   : > { %v1012_v42 = vpop.f32.mrb[1].mxu1 }
  0xec   : > { %v487_v45 = vpop.f32.mrb[2].mxu1 }
  0xed   : > { %v1013_v47 = vpop.f32.mrb[3].mxu1 }
  0xee   : > { %v416_v41 = vpop.f32.mrb[0].mxu0 }
  0xef   : > { %v1000_v43 = vpop.f32.mrb[1].mxu0  ;;  %v485_v44 = vadd.f32 %v484_v40, %v416_v41 }
  0xf0   : > { %v419_v46 = vpop.f32.mrb[2].mxu0 }
  0xf1   : > { %v1001_v48 = vpop.f32.mrb[3].mxu0 }
  0xf3   : > { %v717_v49 = vpop.f32.mrb[4].mxu1 }
  0xf4   : > { %v1040_v51 = vpop.f32.mrb[5].mxu1 }
  0xf5   : > { %v720_v53 = vpop.f32.mrb[6].mxu1 }
  0xf6   : > { %v566_v50 = vpop.f32.mrb[4].mxu0  ;;  %v1041_v55 = vpop.f32.mrb[7].mxu1 }
  0xf7   : > { %v1020_v52 = vpop.f32.mrb[5].mxu0 }
  0xf8   : > { %v569_v54 = vpop.f32.mrb[6].mxu0 }
  0xf9   : > { %v1021_v56 = vpop.f32.mrb[7].mxu0 }
 0x103   : > { %v784_v57 = vpop.f32.mrb[8].mxu1 }
 0x104   : > { %v785_v59 = vadd.f32 %v784_v57, %v717_v49  ;;  %v1052_v60 = vpop.f32.mrb[9].mxu1 }
 0x105   : > { %v787_v63 = vpop.f32.mrb[10].mxu1 }
 0x106   : > { %v633_v58 = vpop.f32.mrb[8].mxu0  ;;  %v1053_v1 = vpop.f32.mrb[11].mxu1 }
 0x107   : > { %v634_v61 = vadd.f32 %v633_v58, %v566_v50  ;;  %v1032_v62 = vpop.f32.mrb[9].mxu0 }
 0x108   : > { %v636_v0 = vpop.f32.mrb[10].mxu0 }
 0x109   : > { %v640_v2 = vadd.f32 %v634_v61, %v485_v44  ;;  %v1033_v3 = vpop.f32.mrb[11].mxu0 }
 0x10b   : > { %v791_v5 = vadd.f32 %v785_v59, %v640_v2 }
 0x10d   : > { %v801_v6 = vadd.f32 %v965_v4, %v791_v5 }
 0x10f   : > { %v802_v7 = vmax.f32 %v801_v6, 0.0 }
 0x111   : > { %v803_v8 = vpack.c.bf16 %v802_v7, %v802_v7 }
 0x113   : > { %804 = vst [vmem:[%s334_s29] sm:$0xf] %v803_v8 }
 0x114 PF: > { %s15_s20 = sadd.s32 1, %s1126_s20   ;;  %s1303_s18 = smov %s1122_s19 }
 0x115   : > { %p12_p5 = scmp.ge.s32.totalorder %s15_s20, 4   ;;  %s1304_s19 = smov %s1306_s21 }
 0x117   :  { %14 = sbr.rel (!%p12_p5) target bundleno = 2 (0x2), region = 77 }

</bundles_post_ra>
